<compile_context>
chip_gen: v5e
topology: v5e:2x2
jax: 0.10.0
libtpu: 0.0.40
codegen_flags: <defaults>
</compile_context>

<pallas_src>
import math

import jax
import jax.numpy as jnp
from jax.experimental import pallas as pl
from jax.experimental.pallas import tpu as pltpu

# ----------------------------- problem sizes --------------------------------
B = 4          # true batch
B_PAD = 8      # padded batch (f32 sublane minimum)
T_IN = 32      # batch_x feature length
T_OUT = 16     # forecast horizon (prediction width)
FC = 128       # spectral coefficient width (f_c features) -> lane aligned
CW = 16        # westimator conditioning channels (before the *2 flatten)
D_W = 2 * CW   # flattened westimator input dim
K = 8          # SPN mixture components
STEPS = 1
NUM_OPS = 2
LAYERS = 2

# fused-weight column layouts
SPEC_W_COLS = 2 * FC + 2 * T_OUT            # 288 : [fc_t | fc_s | pred_t | pred_s]
WEST_W_COLS = 2 * K * FC + 2 * K            # 2064: [wl_c | wl_w | ws_c | ws_w]
LOG_2PI = math.log(2.0 * math.pi)


# --------------------- fused kernel: both cells in one pass ------------------
def fused_network_kernel(mix_ref,            # (4,) SMEM f32: [wn0, wn1, wr0, wr1] (already softmaxed)
                         x_ref,              # (B_PAD, T_IN)  f32
                         xw_ref,             # (B_PAD, D_W)   f32
                         w_spec_ref,         # (T_IN, 288)    bf16
                         b_spec_ref,         # (1, 288)       f32
                         w_west_ref,         # (D_W, 2064)    bf16 (leaf bias already holds +mu)
                         b_west_ref,         # (1, 2064)      f32
                         ones_ref,           # (K*FC, K)      bf16 block-diagonal ones
                         pred_ref,           # (B_PAD, T_OUT) f32 out
                         ll_ref):            # (B_PAD, K)     f32 out
    wn0 = mix_ref[0]
    wn1 = mix_ref[1]
    wr0 = mix_ref[2]
    wr1 = mix_ref[3]

    # ---------------- spectral cell: one matmul, slice, mix -------------------
    spec = jnp.dot(x_ref[...], w_spec_ref[...].astype(jnp.float32),
                   preferred_element_type=jnp.float32) + b_spec_ref[...]   # (B_PAD, 288)
    fc_t = spec[:, 0:FC]                                   # lane-aligned
    fc_s = spec[:, FC:2 * FC]                              # lane-aligned
    pred_t = spec[:, 2 * FC:2 * FC + T_OUT]
    pred_s = spec[:, 2 * FC + T_OUT:2 * FC + 2 * T_OUT]

    pred_ref[...] = pred_t * wn0 + pred_s * wn1            # (B_PAD, T_OUT)
    f_c = fc_t * wn0 + fc_s * wn1                          # (B_PAD, FC) -- stays on chip
    # TODO(synk): original module applies .detach() to f_c before the westimator
    # cell; if this kernel is ever differentiated, wrap f_c in stop_gradient.

    # ---------------- westimator cell: one matmul, two SPN branches -----------
    west = jnp.dot(xw_ref[...], w_west_ref[...].astype(jnp.float32),
                   preferred_element_type=jnp.float32) + b_west_ref[...]   # (B_PAD, 2064)
    ones_bd = ones_ref[...].astype(jnp.float32)            # (K*FC, K), exact in bf16

    # Replicate f_c K times along lanes: 128-aligned concat -> pure vreg copies,
    # no cross-lane (XLU) movement and no (B, K, FC) relayout.
    f_c_rep = jnp.concatenate([f_c] * K, axis=-1)          # (B_PAD, K*FC)

    def branch_ll(sum_params, leaf_plus_mu):
        # SPN surrogate: Gaussian-mixture per-component log-likelihood.
        m = jnp.max(sum_params, axis=-1, keepdims=True)
        lse = m + jnp.log(jnp.sum(jnp.exp(sum_params - m), axis=-1, keepdims=True))
        log_w = sum_params - lse                                           # (B_PAD, K)
        diff = f_c_rep - leaf_plus_mu                                      # (B_PAD, K*FC)
        # Per-component sum of squares via one MXU matmul against the constant
        # block-diagonal ones matrix (the MXU slot is otherwise idle here).
        sumsq = jnp.dot(diff * diff, ones_bd,
                        preferred_element_type=jnp.float32)                # (B_PAD, K)
        return log_w - 0.5 * sumsq - 0.5 * FC * LOG_2PI

    ll_c = branch_ll(west[:, 2 * K * FC:2 * K * FC + K],      west[:, 0:K * FC])
    ll_w = branch_ll(west[:, 2 * K * FC + K:2 * K * FC + 2 * K], west[:, K * FC:2 * K * FC])
    ll_ref[...] = ll_c * wr0 + ll_w * wr1                                  # (B_PAD, K)


# ------------------------------- wrapper --------------------------------------
_VMEM = pl.BlockSpec(memory_space=pltpu.MemorySpace.VMEM)
_SMEM = pl.BlockSpec(memory_space=pltpu.MemorySpace.SMEM)


def _cost_estimate():
    flops = (2 * B_PAD * T_IN * SPEC_W_COLS
             + 2 * B_PAD * D_W * WEST_W_COLS
             + 2 * 2 * B_PAD * (K * FC) * K)                 # 2 ones-matrix reductions
    bytes_accessed = (
        T_IN * SPEC_W_COLS * 2 + SPEC_W_COLS * 4             # w_spec bf16 + b_spec f32
        + D_W * WEST_W_COLS * 2 + WEST_W_COLS * 4             # w_west bf16 + b_west f32
        + K * FC * K * 2                                      # ones_bd bf16
        + B_PAD * (T_IN + D_W) * 4 + 4 * 4                    # activations + mix
        + B_PAD * (T_OUT + K) * 4)                            # outputs
    transcendentals = 2 * B_PAD * K + 2 * B_PAD               # exp + log in logsumexp
    return pl.CostEstimate(flops=flops, transcendentals=transcendentals,
                           bytes_accessed=bytes_accessed)


def fused_forward(mix, batch_x, xw_flat, fused):
    bsz = batch_x.shape[0]
    pad = B_PAD - bsz
    x_p = jnp.pad(batch_x, ((0, pad), (0, 0)))
    xw_p = jnp.pad(xw_flat, ((0, pad), (0, 0)))

    pred, ll = pl.pallas_call(
        fused_network_kernel,
        out_shape=(jax.ShapeDtypeStruct((B_PAD, T_OUT), jnp.float32),
                   jax.ShapeDtypeStruct((B_PAD, K), jnp.float32)),
        in_specs=[_SMEM] + [_VMEM] * 7,
        out_specs=(_VMEM, _VMEM),
        cost_estimate=_cost_estimate(),
    )(mix, x_p, xw_p,
      fused["w_spec"], fused["b_spec"],
      fused["w_west"], fused["b_west"],
      fused["ones_bd"])
    return pred[:bsz], ll[:bsz]


# ------------------------------ the Network ----------------------------------
class NetworkPallas:
    def __init__(self, key, layers=LAYERS, steps=STEPS):
        self._layers = layers
        self._steps = steps
        ks = jax.random.split(key, 20)

        def lin(k, shape, scale):
            return (scale * jax.random.normal(k, shape)).astype(jnp.float32)

        def qlin(k, shape, scale):
            # bf16-representable matmul weights (kernel stores them as bf16; the
            # pure-JAX reference uses the identical rounded values in f32).
            w = lin(k, shape, scale)
            return w.astype(jnp.bfloat16).astype(jnp.float32)

        # per-branch surrogate params (also used by the pure-JAX reference)
        self.spectral = {
            "wp_t": qlin(ks[0], (T_IN, T_OUT), 0.05), "bp_t": lin(ks[12], (1, T_OUT), 0.01),
            "wf_t": qlin(ks[1], (T_IN, FC), 0.05),    "bf_t": lin(ks[13], (1, FC), 0.01),
            "wp_s": qlin(ks[2], (T_IN, T_OUT), 0.05), "bp_s": lin(ks[14], (1, T_OUT), 0.01),
            "wf_s": qlin(ks[3], (T_IN, FC), 0.05),    "bf_s": lin(ks[15], (1, FC), 0.01),
        }
        self.cwspn = {
            "ws": qlin(ks[4], (D_W, K), 0.05),      "bs": lin(ks[16], (1, K), 0.01),
            "wl": qlin(ks[5], (D_W, K * FC), 0.02), "bl": lin(ks[17], (1, K * FC), 0.01),
            "mu": lin(ks[6], (K, FC), 0.1),
        }
        self.wein = {
            "ws": qlin(ks[7], (D_W, K), 0.05),      "bs": lin(ks[18], (1, K), 0.01),
            "wl": qlin(ks[8], (D_W, K * FC), 0.02), "bl": lin(ks[19], (1, K * FC), 0.01),
            "mu": lin(ks[9], (K, FC), 0.1),
        }

        # _initialize_alphas: k = steps, num_ops = 2
        k_edges = sum(1 for _ in range(steps))
        self.alphas_normal = (0.001 * jax.random.normal(ks[10], (k_edges, NUM_OPS))).astype(jnp.float32)
        self.alphas_reduce = (0.001 * jax.random.normal(ks[11], (k_edges, NUM_OPS))).astype(jnp.float32)

        # ---- pre-concatenated (fused) weights for the single-kernel hot path ----
        p, c, w = self.spectral, self.cwspn, self.wein
        row = jnp.arange(K * FC) // FC
        ones_bd = (row[:, None] == jnp.arange(K)[None, :]).astype(jnp.bfloat16)  # (K*FC, K)
        self.fused = {
            # spectral: [fc_t | fc_s | pred_t | pred_s]  -> (T_IN, 288), bf16
            "w_spec": jnp.concatenate([p["wf_t"], p["wf_s"], p["wp_t"], p["wp_s"]],
                                      axis=1).astype(jnp.bfloat16),
            "b_spec": jnp.concatenate([p["bf_t"], p["bf_s"], p["bp_t"], p["bp_s"]], axis=1),
            # westimator: [wl_c | wl_w | ws_c | ws_w]    -> (D_W, 2064), bf16
            "w_west": jnp.concatenate([c["wl"], w["wl"], c["ws"], w["ws"]],
                                      axis=1).astype(jnp.bfloat16),
            # mu folded into the leaf-bias columns (f32) -> no mu subtraction in-kernel
            "b_west": jnp.concatenate([c["bl"] + c["mu"].reshape(1, K * FC),
                                       w["bl"] + w["mu"].reshape(1, K * FC),
                                       c["bs"], w["bs"]], axis=1),
            "ones_bd": ones_bd,
        }

    def forward(self, batch_x, batch_y, batch_westimator_x_val, batch_westimator_y_val):
        # Both cells fused into a single Pallas kernel; f_c never leaves the chip.
        x_flat = batch_westimator_x_val.reshape(
            (batch_westimator_x_val.shape[0], batch_westimator_x_val.shape[1] * 2))
        # Softmax over the (1, 2) alpha rows hoisted out of the kernel.
        wn = jax.nn.softmax(self.alphas_normal, axis=-1)[0]
        wr = jax.nn.softmax(self.alphas_reduce, axis=-1)[0]
        mix = jnp.concatenate([wn, wr]).astype(jnp.float32)                # (4,)
        prediction, prediction_ll = fused_forward(mix, batch_x, x_flat, self.fused)
        return prediction, prediction_ll


# --------------------------- pure-JAX reference -------------------------------
def _ref_forward(net, batch_x, batch_y, bwx, bwy):
    wn = jax.nn.softmax(net.alphas_normal, axis=-1)
    p = net.spectral
    pred_t = batch_x @ p["wp_t"] + p["bp_t"]
    fc_t = batch_x @ p["wf_t"] + p["bf_t"]
    pred_s = batch_x @ p["wp_s"] + p["bp_s"]
    fc_s = batch_x @ p["wf_s"] + p["bf_s"]
    pred = pred_t * wn[0, 0] + pred_s * wn[0, 1]
    f_c = fc_t * wn[0, 0] + fc_s * wn[0, 1]

    wr = jax.nn.softmax(net.alphas_reduce, axis=-1)
    x_flat = bwx.reshape((bwx.shape[0], bwx.shape[1] * 2))

    def branch(pp):
        sp = x_flat @ pp["ws"] + pp["bs"]
        lp = x_flat @ pp["wl"] + pp["bl"]
        log_w = sp - jax.nn.logsumexp(sp, axis=-1, keepdims=True)
        lp3 = lp.reshape((lp.shape[0], K, FC))
        diff = f_c[:, None, :] - pp["mu"][None, :, :] - lp3
        comp = -0.5 * jnp.sum(diff * diff, axis=-1) - 0.5 * FC * jnp.log(2.0 * jnp.pi)
        return log_w + comp

    ll = branch(net.cwspn) * wr[0, 0] + branch(net.wein) * wr[0, 1]
    return pred, ll


# ---------------------------------- main --------------------------------------
if __name__ == "__main__":
    root = jax.random.PRNGKey(0)
    k_net, k_x, k_y, k_wx, k_wy = jax.random.split(root, 5)

    net = NetworkPallas(k_net)

    batch_x = jax.random.normal(k_x, (B, T_IN), dtype=jnp.float32)
    batch_y = jax.random.normal(k_y, (B, T_OUT), dtype=jnp.float32)
    batch_westimator_x_val = jax.random.normal(k_wx, (B, CW, 2), dtype=jnp.float32)
    batch_westimator_y_val = jax.random.normal(k_wy, (B, CW), dtype=jnp.float32)

    prediction, prediction_ll = net.forward(batch_x, batch_y,
                                            batch_westimator_x_val, batch_westimator_y_val)
    prediction = jax.block_until_ready(prediction)
    prediction_ll = jax.block_until_ready(prediction_ll)

    ref_pred, ref_ll = _ref_forward(net, batch_x, batch_y,
                                    batch_westimator_x_val, batch_westimator_y_val)
    assert prediction.shape == (B, T_OUT) and prediction_ll.shape == (B, K)
    assert jnp.allclose(prediction, ref_pred, rtol=1e-3, atol=1e-3)
    assert jnp.allclose(prediction_ll, ref_ll, rtol=1e-3, atol=1e-3)

    # TODO(synk): the `spn_2 == []` branch (EinsumNetwork.log_likelihoods + turn_off_wein)
    # is not exercised, matching the configuration where wein is a non-empty SPN object.
    print("KERNEL_OK")
</pallas_src>

<mosaic_0001>
module attributes {stable_mosaic.version = 11 : i64} {
  func.func @fused_network_kernel(%arg0: memref<4xf32, #tpu.memory_space<smem>>, %arg1: memref<8x32xf32, #tpu.memory_space<vmem>>, %arg2: memref<8x32xf32, #tpu.memory_space<vmem>>, %arg3: memref<32x288xbf16, #tpu.memory_space<vmem>>, %arg4: memref<1x288xf32, #tpu.memory_space<vmem>>, %arg5: memref<32x2064xbf16, #tpu.memory_space<vmem>>, %arg6: memref<1x2064xf32, #tpu.memory_space<vmem>>, %arg7: memref<1024x8xbf16, #tpu.memory_space<vmem>>, %arg8: memref<8x16xf32, #tpu.memory_space<vmem>>, %arg9: memref<8x8xf32, #tpu.memory_space<vmem>>) attributes {dimension_semantics = [], scalar_prefetch = 0 : i64, scratch_operands = 0 : i64, tpu.core_type = #tpu.core_type<tc>} {
    %c0 = arith.constant 0 : index
    %0 = memref.load %arg0[%c0] : memref<4xf32, #tpu.memory_space<smem>>
    %c1 = arith.constant 1 : index
    %1 = memref.load %arg0[%c1] : memref<4xf32, #tpu.memory_space<smem>>
    %c2 = arith.constant 2 : index
    %2 = memref.load %arg0[%c2] : memref<4xf32, #tpu.memory_space<smem>>
    %c3 = arith.constant 3 : index
    %3 = memref.load %arg0[%c3] : memref<4xf32, #tpu.memory_space<smem>>
    %c0_0 = arith.constant 0 : index
    %c0_1 = arith.constant 0 : index
    %4 = vector.load %arg1[%c0_0, %c0_1] : memref<8x32xf32, #tpu.memory_space<vmem>>, vector<8x32xf32>
    %c0_2 = arith.constant 0 : index
    %c0_3 = arith.constant 0 : index
    %5 = vector.load %arg3[%c0_2, %c0_3] : memref<32x288xbf16, #tpu.memory_space<vmem>>, vector<32x288xbf16>
    %6 = arith.extf %5 : vector<32x288xbf16> to vector<32x288xf32>
    %cst = arith.constant dense<0.000000e+00> : vector<8x288xf32>
    %7 = tpu.matmul %4, %6, %cst {dimension_numbers = #tpu.dot_dimension_numbers<[1], [0], [0], [1], [0, 0, 1, 1], [], []>} : vector<8x32xf32>, vector<32x288xf32>, vector<8x288xf32> -> vector<8x288xf32>
    %c0_4 = arith.constant 0 : index
    %c0_5 = arith.constant 0 : index
    %8 = vector.load %arg4[%c0_4, %c0_5] : memref<1x288xf32, #tpu.memory_space<vmem>>, vector<1x288xf32>
    %9 = vector.broadcast %8 : vector<1x288xf32> to vector<8x288xf32>
    %10 = arith.addf %7, %9 : vector<8x288xf32>
    %11 = vector.extract_strided_slice %10 {offsets = [0, 0], sizes = [8, 128], strides = [1, 1]} : vector<8x288xf32> to vector<8x128xf32>
    %12 = vector.extract_strided_slice %10 {offsets = [0, 128], sizes = [8, 128], strides = [1, 1]} : vector<8x288xf32> to vector<8x128xf32>
    %13 = vector.extract_strided_slice %10 {offsets = [0, 256], sizes = [8, 16], strides = [1, 1]} : vector<8x288xf32> to vector<8x16xf32>
    %14 = vector.extract_strided_slice %10 {offsets = [0, 272], sizes = [8, 16], strides = [1, 1]} : vector<8x288xf32> to vector<8x16xf32>
    %15 = vector.broadcast %0 : f32 to vector<8x16xf32>
    %16 = arith.mulf %13, %15 : vector<8x16xf32>
    %17 = vector.broadcast %1 : f32 to vector<8x16xf32>
    %18 = arith.mulf %14, %17 : vector<8x16xf32>
    %19 = arith.addf %16, %18 : vector<8x16xf32>
    %c0_6 = arith.constant 0 : index
    %c0_7 = arith.constant 0 : index
    %20 = vector.load %arg8[%c0_6, %c0_7] : memref<8x16xf32, #tpu.memory_space<vmem>>, vector<8x16xf32>
    tpu.vector_store %arg8[%c0_6, %c0_7], %19 {strides = array<i32>} : memref<8x16xf32, #tpu.memory_space<vmem>>, vector<8x16xf32>,
    %21 = vector.broadcast %0 : f32 to vector<8x128xf32>
    %22 = arith.mulf %11, %21 : vector<8x128xf32>
    %23 = vector.broadcast %1 : f32 to vector<8x128xf32>
    %24 = arith.mulf %12, %23 : vector<8x128xf32>
    %25 = arith.addf %22, %24 : vector<8x128xf32>
    %c0_8 = arith.constant 0 : index
    %c0_9 = arith.constant 0 : index
    %26 = vector.load %arg2[%c0_8, %c0_9] : memref<8x32xf32, #tpu.memory_space<vmem>>, vector<8x32xf32>
    %c0_10 = arith.constant 0 : index
    %c0_11 = arith.constant 0 : index
    %27 = vector.load %arg5[%c0_10, %c0_11] : memref<32x2064xbf16, #tpu.memory_space<vmem>>, vector<32x2064xbf16>
    %28 = arith.extf %27 : vector<32x2064xbf16> to vector<32x2064xf32>
    %cst_12 = arith.constant dense<0.000000e+00> : vector<8x2064xf32>
    %29 = tpu.matmul %26, %28, %cst_12 {dimension_numbers = #tpu.dot_dimension_numbers<[1], [0], [0], [1], [0, 0, 1, 1], [], []>} : vector<8x32xf32>, vector<32x2064xf32>, vector<8x2064xf32> -> vector<8x2064xf32>
    %c0_13 = arith.constant 0 : index
    %c0_14 = arith.constant 0 : index
    %30 = vector.load %arg6[%c0_13, %c0_14] : memref<1x2064xf32, #tpu.memory_space<vmem>>, vector<1x2064xf32>
    %31 = vector.broadcast %30 : vector<1x2064xf32> to vector<8x2064xf32>
    %32 = arith.addf %29, %31 : vector<8x2064xf32>
    %c0_15 = arith.constant 0 : index
    %c0_16 = arith.constant 0 : index
    %33 = vector.load %arg7[%c0_15, %c0_16] : memref<1024x8xbf16, #tpu.memory_space<vmem>>, vector<1024x8xbf16>
    %34 = arith.extf %33 : vector<1024x8xbf16> to vector<1024x8xf32>
    %35 = tpu.concatenate %25, %25, %25, %25, %25, %25, %25, %25 in 1 : vector<8x128xf32>, vector<8x128xf32>, vector<8x128xf32>, vector<8x128xf32>, vector<8x128xf32>, vector<8x128xf32>, vector<8x128xf32>, vector<8x128xf32> -> vector<8x1024xf32>
    %36 = vector.extract_strided_slice %32 {offsets = [0, 2048], sizes = [8, 8], strides = [1, 1]} : vector<8x2064xf32> to vector<8x8xf32>
    %37 = vector.extract_strided_slice %32 {offsets = [0, 0], sizes = [8, 1024], strides = [1, 1]} : vector<8x2064xf32> to vector<8x1024xf32>
    %cst_17 = arith.constant dense<0xFF800000> : vector<8xf32>
    %38 = vector.multi_reduction <maximumf>, %36, %cst_17 [1] : vector<8x8xf32> to vector<8xf32>
    %39 = vector.shape_cast %38 : vector<8xf32> to vector<8x1xf32>
    %40 = vector.broadcast %39 : vector<8x1xf32> to vector<8x8xf32>
    %41 = arith.subf %36, %40 : vector<8x8xf32>
    %42 = math.exp %41 : vector<8x8xf32>
    %cst_18 = arith.constant dense<0.000000e+00> : vector<8xf32>
    %43 = vector.multi_reduction <add>, %42, %cst_18 [1] : vector<8x8xf32> to vector<8xf32>
    %44 = vector.shape_cast %43 : vector<8xf32> to vector<8x1xf32>
    %45 = math.log %44 : vector<8x1xf32>
    %46 = arith.addf %39, %45 : vector<8x1xf32>
    %47 = vector.broadcast %46 : vector<8x1xf32> to vector<8x8xf32>
    %48 = arith.subf %36, %47 : vector<8x8xf32>
    %49 = arith.subf %35, %37 : vector<8x1024xf32>
    %50 = arith.mulf %49, %49 : vector<8x1024xf32>
    %cst_19 = arith.constant dense<0.000000e+00> : vector<8x8xf32>
    %51 = tpu.matmul %50, %34, %cst_19 {dimension_numbers = #tpu.dot_dimension_numbers<[1], [0], [0], [1], [0, 0, 1, 1], [], []>} : vector<8x1024xf32>, vector<1024x8xf32>, vector<8x8xf32> -> vector<8x8xf32>
    %cst_20 = arith.constant 5.000000e-01 : f32
    %52 = vector.broadcast %cst_20 : f32 to vector<8x8xf32>
    %53 = arith.mulf %52, %51 : vector<8x8xf32>
    %54 = arith.subf %48, %53 : vector<8x8xf32>
    %cst_21 = arith.constant 117.62413 : f32
    %55 = vector.broadcast %cst_21 : f32 to vector<8x8xf32>
    %56 = arith.subf %54, %55 : vector<8x8xf32>
    %57 = vector.extract_strided_slice %32 {offsets = [0, 2056], sizes = [8, 8], strides = [1, 1]} : vector<8x2064xf32> to vector<8x8xf32>
    %58 = vector.extract_strided_slice %32 {offsets = [0, 1024], sizes = [8, 1024], strides = [1, 1]} : vector<8x2064xf32> to vector<8x1024xf32>
    %cst_22 = arith.constant dense<0xFF800000> : vector<8xf32>
    %59 = vector.multi_reduction <maximumf>, %57, %cst_22 [1] : vector<8x8xf32> to vector<8xf32>
    %60 = vector.shape_cast %59 : vector<8xf32> to vector<8x1xf32>
    %61 = vector.broadcast %60 : vector<8x1xf32> to vector<8x8xf32>
    %62 = arith.subf %57, %61 : vector<8x8xf32>
    %63 = math.exp %62 : vector<8x8xf32>
    %cst_23 = arith.constant dense<0.000000e+00> : vector<8xf32>
    %64 = vector.multi_reduction <add>, %63, %cst_23 [1] : vector<8x8xf32> to vector<8xf32>
    %65 = vector.shape_cast %64 : vector<8xf32> to vector<8x1xf32>
    %66 = math.log %65 : vector<8x1xf32>
    %67 = arith.addf %60, %66 : vector<8x1xf32>
    %68 = vector.broadcast %67 : vector<8x1xf32> to vector<8x8xf32>
    %69 = arith.subf %57, %68 : vector<8x8xf32>
    %70 = arith.subf %35, %58 : vector<8x1024xf32>
    %71 = arith.mulf %70, %70 : vector<8x1024xf32>
    %cst_24 = arith.constant dense<0.000000e+00> : vector<8x8xf32>
    %72 = tpu.matmul %71, %34, %cst_24 {dimension_numbers = #tpu.dot_dimension_numbers<[1], [0], [0], [1], [0, 0, 1, 1], [], []>} : vector<8x1024xf32>, vector<1024x8xf32>, vector<8x8xf32> -> vector<8x8xf32>
    %cst_25 = arith.constant 5.000000e-01 : f32
    %73 = vector.broadcast %cst_25 : f32 to vector<8x8xf32>
    %74 = arith.mulf %73, %72 : vector<8x8xf32>
    %75 = arith.subf %69, %74 : vector<8x8xf32>
    %cst_26 = arith.constant 117.62413 : f32
    %76 = vector.broadcast %cst_26 : f32 to vector<8x8xf32>
    %77 = arith.subf %75, %76 : vector<8x8xf32>
    %78 = vector.broadcast %2 : f32 to vector<8x8xf32>
    %79 = arith.mulf %56, %78 : vector<8x8xf32>
    %80 = vector.broadcast %3 : f32 to vector<8x8xf32>
    %81 = arith.mulf %77, %80 : vector<8x8xf32>
    %82 = arith.addf %79, %81 : vector<8x8xf32>
    %c0_27 = arith.constant 0 : index
    %c0_28 = arith.constant 0 : index
    %83 = vector.load %arg9[%c0_27, %c0_28] : memref<8x8xf32, #tpu.memory_space<vmem>>, vector<8x8xf32>
    tpu.vector_store %arg9[%c0_27, %c0_28], %82 {strides = array<i32>} : memref<8x8xf32, #tpu.memory_space<vmem>>, vector<8x8xf32>,
    return
  }
}

</mosaic_0001>

<bundles_post_ra>
// kernel: tpu_custom_call.1
= control target key start
LH: loop header
LB: loop body
LE: loop exit
PB: predicated region body
PF: predicated region fallthrough
CT: control target
= control target key end

     0   :  { %15 = vsyncpa [#allocation4], 0  ;;  %s3107_s0 = inlined_call_operand.vmem [shape: f32[4], index: 0, kind: input, shape index: {}]   ;;  %s3108_s1 = inlined_call_operand.vmem [shape: f32[8,32], index: 1, kind: input, shape index: {}]   ;;  %s3109_s2 = inlined_call_operand.vmem [shape: f32[8,32], index: 2, kind: input, shape index: {}]   ;;  %s3110_s3 = inlined_call_operand.vmem [shape: bf16[32,288], index: 3, kind: input, shape index: {}]   ;;  %s3111_s4 = inlined_call_operand.vmem [shape: f32[1,288], index: 4, kind: input, shape index: {}]   ;;  %s3112_s5 = inlined_call_operand.vmem [shape: bf16[32,2064], index: 5, kind: input, shape index: {}]   ;;  %s3113_s6 = inlined_call_operand.vmem [shape: f32[1,2064], index: 6, kind: input, shape index: {}]   ;;  %s3114_s7 = inlined_call_operand.vmem [shape: bf16[1024,8], index: 7, kind: input, shape index: {}]   ;;  %s3115_s8 = inlined_call_operand.hbm [shape: f32[8,16], index: 8, kind: output, shape index: {0}]   ;;  %s3116_s9 = inlined_call_operand.hbm [shape: f32[8,8], index: 9, kind: output, shape index: {1}]  }
   0x1   :  { %16 = vsyncpa [#allocation3], 0 }
   0x2   :  { %17 = vsyncpa [#allocation7], 0  ;;  %s23_s11 = sshll.u32 %s3107_s0, 4  ;;  %s1763_s12 = smov [#allocation2]   ;;  %s24_s11 = int_to_ptr.vmem [resolvable:$true] %s23_s11 }
   0x3   :  { %26 = dma.vmem_to_smem %s24_s11, 16, %s1763_s12, [#allocation4]  }
   0x4   :  { %1757 = dma.done.wait [#allocation4], 16  }
   0x5   :  { %1758 = vsyncadd [#allocation4], 4294967280 }
   0x6   :  { %45 = sfence }
   0x7   :  { %v57_v0 = vld [vmem:[%s3110_s3 + $0x24] sm:$0xff]  ;;  %v58_v1 = vld [vmem:[%s3110_s3 + $0x2c] sm:$0xf]  ;;  %v55_v7 = vld [vmem:[%s3110_s3 + $0x18] sm:$0xff]  ;;  %vm79_vm0 = vcmask 261120   ;;  %s2765_s27 = sld [smem:[#allocation2]] }
   0x8   :  { %v1831_v2 = vld [vmem:[%s3112_s5 + $0xcc] sm:$0xff]  ;;  %v68_v3 = vunpack.c.l.bf16 %v57_v0  ;;  %v69_v4 = vunpack.c.h.bf16 %v57_v0  ;;  %v70_v5 = vunpack.c.l.bf16 %v58_v1  ;;  %v56_v8 = vld [vmem:[%s3110_s3 + $0x20] sm:$0xf]  ;;  %v65_v10 = vunpack.c.l.bf16 %v55_v7  ;;  %v54_v15 = vld [vmem:[%s3110_s3 + $0x14] sm:$0xf]  ;;  %s2767_s28 = sld [smem:[#allocation2 + $0x1]] }
   0x9   :  { %v245_v6 = vunpack.c.l.bf16 %v1831_v2  ;;  %v1843_v9 = vld [vmem:[%s3112_s5 + $0x88] sm:$0xff]  ;;  %v66_v11 = vunpack.c.h.bf16 %v55_v7  ;;  %v67_v12 = vunpack.c.l.bf16 %v56_v8  ;;  %v51_v19 = vld [vmem:[%s3110_s3] sm:$0xff]  ;;  %v64_v22 = vunpack.c.l.bf16 %v54_v15  ;;  %v186_v29 = vld [vmem:[%s3112_s5 + $0xd4] sm:$0xff]  ;;  %s1765_s13 = smov 8   ;;  %s1766_s14 = smov 112  }
   0xa   :  { %v228_v13 = vunpack.c.l.bf16 %v1843_v9  ;;  %v53_v14 = vld [vmem:[%s3110_s3 + $0xc] sm:$0xff]  ;;  %v1855_v16 = vld [vmem:[%s3112_s5 + $0x44] sm:$0xff]  ;;  %95 = vmatpush.msra.mxu0 %v68_v3  ;;  %115 = vmatpush.msra.mxu1 %v69_v4  ;;  %v59_v24 = vunpack.c.l.bf16 %v51_v19  ;;  %v60_v25 = vunpack.c.h.bf16 %v51_v19  ;;  %v1873_v28 = vld [vmem:[%s3112_s5 + $0xdc] sm:$0xff]  ;;  %v246_v34 = vunpack.c.h.bf16 %v1831_v2  ;;  %s1767_s15 = smov [#allocation5]   ;;  %s1312_s0 = sshll.u32 %s3115_s8, 4  ;;  %s1313_s0 = int_to_ptr.hbm [resolvable:$true] %s1312_s0 }
   0xb   :  { %v62_v17 = vunpack.c.l.bf16 %v53_v14  ;;  %v63_v18 = vunpack.c.h.bf16 %v53_v14  ;;  %v52_v20 = vld [vmem:[%s3110_s3 + $0x8] sm:$0xf]  ;;  %v1866_v21 = vld [vmem:[%s3112_s5] sm:$0xff]  ;;  %135 = vmatpush.msra.mxu2 %v70_v5  ;;  %317 = vmatpush.msra.mxu3 %v245_v6  ;;  %v211_v23 = vunpack.c.l.bf16 %v1855_v16  ;;  %v1884_v31 = vld [vmem:[%s3112_s5 + $0x98] sm:$0xff]  ;;  %v249_v33 = vunpack.c.l.bf16 %v1873_v28  ;;  %s1340_s3 = sld [smem:[#allocation2 + $0x3]]  ;;  %s1310_s16 = sshll.u32 %s1767_s15, 4  ;;  %s1311_s16 = int_to_ptr.vmem [resolvable:$true] %s1310_s16 }
   0xc   :  { %96 = vmatpush.msra.mxu0 %v65_v10  ;;  %116 = vmatpush.msra.mxu1 %v66_v11  ;;  %v61_v26 = vunpack.c.l.bf16 %v52_v20  ;;  %v194_v27 = vunpack.c.l.bf16 %v1866_v21  ;;  %v50_v30 = vld [vmem:[%s3108_s1] sm:$0xff]  ;;  %v177_v35 = vld [vmem:[%s3112_s5 + $0x90] sm:$0xff]  ;;  %v247_v36 = vunpack.c.l.bf16 %v186_v29  ;;  %v248_v37 = vunpack.c.h.bf16 %v186_v29  ;;  %v159_v47 = vld [vmem:[%s3112_s5 + $0x8] sm:$0xff]  ;;  %s1339_s19 = sld [smem:[#allocation2 + $0x2]]  ;;  %s1768_s8 = smov [#allocation6]  }
   0xd   :  { %136 = vmatpush.msra.mxu2 %v67_v12  ;;  %318 = vmatpush.msra.mxu3 %v228_v13  ;;  %v1889_v32 = vld [vmem:[%s3109_s2] sm:$0xff]  ;;  %v1899_v38 = vld [vmem:[%s3112_s5 + $0x54] sm:$0xff]  ;;  %v232_v39 = vunpack.c.l.bf16 %v1884_v31  ;;  %v229_v40 = vunpack.c.h.bf16 %v1843_v9  ;;  %v168_v41 = vld [vmem:[%s3112_s5 + $0x4c] sm:$0xff]  ;;  %v230_v42 = vunpack.c.l.bf16 %v177_v35  ;;  %v231_v43 = vunpack.c.h.bf16 %v177_v35  ;;  %s1321_s20 = sshll.u32 %s1768_s8, 4  ;;  %s1323_s23 = sshll.u32 %s3116_s9, 4  ;;  %s1322_s20 = int_to_ptr.vmem [resolvable:$true] %s1321_s20  ;;  %s1324_s23 = int_to_ptr.hbm [resolvable:$true] %s1323_s23 }
   0xe   :  { %97 = vmatpush.msra.mxu0 %v62_v17  ;;  %117 = vmatpush.msra.mxu1 %v63_v18  ;;  %v1914_v44 = vld [vmem:[%s3112_s5 + $0x10] sm:$0xff]  ;;  %v215_v45 = vunpack.c.l.bf16 %v1899_v38  ;;  %v212_v46 = vunpack.c.h.bf16 %v1855_v16  ;;  %v213_v48 = vunpack.c.l.bf16 %v168_v41  ;;  %v214_v49 = vunpack.c.h.bf16 %v168_v41  ;;  %v188_v55 = vld [vmem:[%s3112_s5 + $0xe4] sm:$0xff]  ;;  %v170_v63 = vld [vmem:[%s3112_s5 + $0x5c] sm:$0xff] }
   0xf   :  { %137 = vmatpush.msra.mxu2 %v64_v22  ;;  %319 = vmatpush.msra.mxu3 %v211_v23  ;;  %v198_v50 = vunpack.c.l.bf16 %v1914_v44  ;;  %v195_v51 = vunpack.c.h.bf16 %v1866_v21  ;;  %v196_v52 = vunpack.c.l.bf16 %v159_v47  ;;  %v197_v53 = vunpack.c.h.bf16 %v159_v47  ;;  %v1926_v54 = vld [vmem:[%s3112_s5 + $0xec] sm:$0xff]  ;;  %v179_v57 = vld [vmem:[%s3112_s5 + $0xa0] sm:$0xff]  ;;  %v161_v5 = vld [vmem:[%s3112_s5 + $0x18] sm:$0xff] }
  0x10   :  { %98 = vmatpush.msra.mxu0 %v59_v24  ;;  %118 = vmatpush.msra.mxu1 %v60_v25  ;;  %v1934_v56 = vld [vmem:[%s3112_s5 + $0xa8] sm:$0xff]  ;;  %v253_v58 = vunpack.c.l.bf16 %v1926_v54  ;;  %v252_v59 = vunpack.c.h.bf16 %v188_v55  ;;  %v250_v60 = vunpack.c.h.bf16 %v1873_v28  ;;  %v251_v62 = vunpack.c.l.bf16 %v188_v55  ;;  %v1962_v3 = vld [vmem:[%s3112_s5 + $0x20] sm:$0xff]  ;;  %v1978_v13 = vld [vmem:[%s3112_s5 + $0xb8] sm:$0xff] }
  0x11   :  { %138 = vmatpush.msra.mxu2 %v61_v26  ;;  %320 = vmatpush.msra.mxu3 %v194_v27  ;;  %v1944_v61 = vld [vmem:[%s3112_s5 + $0x64] sm:$0xff]  ;;  %v236_v0 = vunpack.c.l.bf16 %v1934_v56  ;;  %v235_v1 = vunpack.c.h.bf16 %v179_v57  ;;  %v233_v2 = vunpack.c.h.bf16 %v1884_v31  ;;  %v234_v4 = vunpack.c.l.bf16 %v179_v57  ;;  %v1972_v9 = vld [vmem:[%s3112_s5 + $0xfc] sm:$0xff]  ;;  %v190_v16 = vld [vmem:[%s3112_s5 + $0xf4] sm:$0xff] }
  0x12   :  { %1341 = vmatmul.msk.f32.vlgmr.msra.gmra.mxu0 %vm79_vm0, %v50_v30  ;;  %1342 = vmatmul.msk.f32.vlgmr.msra.gmra.mxu1 %vm79_vm0, %v50_v30  ;;  %v219_v6 = vunpack.c.l.bf16 %v1944_v61  ;;  %v218_v7 = vunpack.c.h.bf16 %v170_v63  ;;  %v216_v8 = vunpack.c.h.bf16 %v1899_v38  ;;  %v217_v10 = vunpack.c.l.bf16 %v170_v63  ;;  %v1988_v18 = vld [vmem:[%s3112_s5 + $0x74] sm:$0xff]  ;;  %v193_v26 = vld [vmem:[%s3112_s5 + $0x10c] sm:$0xf]  ;;  %v175_v38 = vld [vmem:[%s3112_s5 + $0x84] sm:$0xf] }
  0x13   :  { %1343 = vmatmul.msk.f32.vlgmr.msra.gmra.mxu2 %vm79_vm0, %v50_v30  ;;  %1344 = vmatmul.msk.f32.vlgmr.msra.gmra.mxu3 %vm79_vm0, %v1889_v32  ;;  %v202_v11 = vunpack.c.l.bf16 %v1962_v3  ;;  %v201_v12 = vunpack.c.h.bf16 %v161_v5  ;;  %v257_v14 = vunpack.c.l.bf16 %v1972_v9  ;;  %v200_v15 = vunpack.c.l.bf16 %v161_v5  ;;  %v181_v20 = vld [vmem:[%s3112_s5 + $0xb0] sm:$0xff]  ;;  %v163_v35 = vld [vmem:[%s3112_s5 + $0x28] sm:$0xff]  ;;  %v165_v57 = vld [vmem:[%s3112_s5 + $0x38] sm:$0xff] }
  0x14   :  { %397 = vmatpush.msrb.mxu3 %v249_v33  ;;  %337 = vmatpush.msrb.mxu0 %v246_v34  ;;  %v199_v17 = vunpack.c.h.bf16 %v1914_v44  ;;  %v240_v19 = vunpack.c.l.bf16 %v1978_v13  ;;  %v2001_v21 = vld [vmem:[%s3112_s5 + $0x30] sm:$0xff]  ;;  %v254_v22 = vunpack.c.h.bf16 %v1926_v54  ;;  %v255_v23 = vunpack.c.l.bf16 %v190_v16  ;;  %v184_v33 = vld [vmem:[%s3112_s5 + $0xc8] sm:$0xf] }
  0x15   :  { %357 = vmatpush.msrb.mxu1 %v247_v36  ;;  %377 = vmatpush.msrb.mxu2 %v248_v37  ;;  %v223_v24 = vunpack.c.l.bf16 %v1988_v18  ;;  %v256_v25 = vunpack.c.h.bf16 %v190_v16  ;;  %v237_v27 = vunpack.c.h.bf16 %v1934_v56  ;;  %v238_v28 = vunpack.c.l.bf16 %v181_v20  ;;  %v172_v29 = vld [vmem:[%s3112_s5 + $0x6c] sm:$0xff] }
  0x16   :  { %398 = vmatpush.msrb.mxu3 %v232_v39  ;;  %338 = vmatpush.msrb.mxu0 %v229_v40  ;;  %v206_v30 = vunpack.c.l.bf16 %v2001_v21  ;;  %v239_v31 = vunpack.c.h.bf16 %v181_v20  ;;  %v220_v34 = vunpack.c.h.bf16 %v1944_v61  ;;  %v261_v36 = vunpack.c.l.bf16 %v193_v26  ;;  %v2084_v5 = vld [vmem:[%s3114_s7 + $0xf0] sm:$0xff]   ;;  %v2158_v26 = vld [vmem:[%s3114_s7 + $0xe0] sm:$0xff]  }
  0x17   :  { %358 = vmatpush.msrb.mxu1 %v230_v42  ;;  %378 = vmatpush.msrb.mxu2 %v231_v43  ;;  %v221_v37 = vunpack.c.l.bf16 %v172_v29  ;;  %v222_v39 = vunpack.c.h.bf16 %v172_v29  ;;  %v203_v40 = vunpack.c.h.bf16 %v1962_v3  ;;  %v244_v41 = vunpack.c.l.bf16 %v184_v33  ;;  %v166_v43 = vld [vmem:[%s3112_s5 + $0x40] sm:$0xf] }
  0x18   :  { %399 = vmatpush.msrb.mxu3 %v215_v45  ;;  %339 = vmatpush.msrb.mxu0 %v212_v46  ;;  %v204_v42 = vunpack.c.l.bf16 %v163_v35  ;;  %v205_v44 = vunpack.c.h.bf16 %v163_v35  ;;  %v192_v45 = vld [vmem:[%s3112_s5 + $0x104] sm:$0xff]  ;;  %v227_v46 = vunpack.c.l.bf16 %v175_v38  ;;  %v258_v47 = vunpack.c.h.bf16 %v1972_v9  ;;  %v2094_v9 = vld [vmem:[%s3114_s7 + $0x30] sm:$0xff]  }
  0x19   :  { %359 = vmatpush.msrb.mxu1 %v213_v48  ;;  %379 = vmatpush.msrb.mxu2 %v214_v49  ;;  %v183_v48 = vld [vmem:[%s3112_s5 + $0xc0] sm:$0xff]  ;;  %v210_v49 = vunpack.c.l.bf16 %v166_v43  ;;  %v241_v54 = vunpack.c.h.bf16 %v1978_v13  ;;  %v207_v63 = vunpack.c.h.bf16 %v2001_v21  ;;  %v209_v3 = vunpack.c.h.bf16 %v165_v57  ;;  %v2139_v21 = vld [vmem:[%s3114_s7 + $0x68] sm:$0xff]  }
  0x1a   :  { %400 = vmatpush.msrb.mxu3 %v198_v50  ;;  %340 = vmatpush.msrb.mxu0 %v195_v51  ;;  %v259_v50 = vunpack.c.l.bf16 %v192_v45  ;;  %v2043_v51 = vld [vmem:[%s3114_s7 + $0xf8] sm:$0xff]   ;;  %v242_v55 = vunpack.c.l.bf16 %v183_v48  ;;  %v243_v56 = vunpack.c.h.bf16 %v183_v48  ;;  %v2178_v33 = vld [vmem:[%s3114_s7 + $0x20] sm:$0xff]   ;;  %v3119_v35 = vunpack.c.h.bf16 %v2158_v26 }
  0x1b   :  { %360 = vmatpush.msrb.mxu1 %v196_v52  ;;  %380 = vmatpush.msrb.mxu2 %v197_v53  ;;  %v260_v52 = vunpack.c.h.bf16 %v192_v45  ;;  %v174_v53 = vld [vmem:[%s3112_s5 + $0x7c] sm:$0xff]  ;;  %v3139_v48 = vunpack.c.l.bf16 %v2178_v33  ;;  %vm1094_vm1 = vcmask 130112   ;;  %vm901_vm2 = vcmask 64512  }
  0x1c   :  { %1345 = vmatmul.msk.f32.vlgmr.msrb.gmra.mxu0 %vm79_vm0, %v1889_v32  ;;  %1346 = vmatmul.msk.f32.vlgmr.msrb.gmra.mxu1 %vm79_vm0, %v1889_v32  ;;  %v226_v61 = vunpack.c.h.bf16 %v174_v53  ;;  %v2197_v38 = vld [vmem:[%s3114_s7 + $0xa0] sm:$0xff]   ;;  %v2222_v45 = vld [vmem:[%s3114_s7 + $0x18] sm:$0xff]   ;;  %vm152_vm3 = vcmask 130048  }
  0x1d   :  { %1347 = vmatmul.msk.f32.vlgmr.msrb.gmra.mxu2 %vm79_vm0, %v1889_v32  ;;  %1348 = vmatmul.msk.f32.vlgmr.msrb.gmra.mxu3 %vm79_vm0, %v1889_v32 }
  0x1e   :  { %477 = vmatpush.msra.mxu3 %v253_v58  ;;  %457 = vmatpush.msra.mxu2 %v252_v59  ;;  %v3164_v58 = vunpack.c.h.bf16 %v2043_v51  ;;  %v224_v59 = vunpack.c.h.bf16 %v1988_v18  ;;  %v3206_v18 = vunpack.c.h.bf16 %v2094_v9 }
  0x1f   :  { %437 = vmatpush.msra.mxu1 %v251_v62  ;;  %417 = vmatpush.msra.mxu0 %v250_v60  ;;  %v225_v60 = vunpack.c.l.bf16 %v174_v53  ;;  %v3152_v62 = vunpack.c.l.bf16 %v2043_v51  ;;  %v3122_v53 = vunpack.c.l.bf16 %v2197_v38 }
  0x20   :  { %478 = vmatpush.msra.mxu3 %v236_v0  ;;  %458 = vmatpush.msra.mxu2 %v235_v1  ;;  %v208_v0 = vunpack.c.l.bf16 %v165_v57  ;;  %v2067_v1 = vld [vmem:[%s3114_s7 + $0x38] sm:$0xff]  }
  0x21   :  { %438 = vmatpush.msra.mxu1 %v234_v4  ;;  %418 = vmatpush.msra.mxu0 %v233_v2  ;;  %v2072_v2 = vld [vmem:[%s3114_s7 + $0x78] sm:$0xff]  }
  0x22   :  { %479 = vmatpush.msra.mxu3 %v219_v6  ;;  %459 = vmatpush.msra.mxu2 %v218_v7  ;;  %v2077_v4 = vld [vmem:[%s3114_s7 + $0xb8] sm:$0xff]   ;;  %v3218_v6 = vunpack.c.h.bf16 %v2067_v1  ;;  %v3212_v7 = vunpack.c.h.bf16 %v2072_v2  ;;  %v3205_v13 = vunpack.c.l.bf16 %v2072_v2 }
  0x23   :  { %439 = vmatpush.msra.mxu1 %v217_v10  ;;  %419 = vmatpush.msra.mxu0 %v216_v8  ;;  %v3211_v8 = vunpack.c.h.bf16 %v2077_v4  ;;  %v2099_v10 = vld [vmem:[%s3114_s7 + $0x70] sm:$0xff]   ;;  %v3187_v16 = vunpack.c.l.bf16 %v2077_v4 }
  0x24   :  { %480 = vmatpush.msra.mxu3 %v202_v11  ;;  %460 = vmatpush.msra.mxu2 %v201_v12  ;;  %v3140_v11 = vunpack.c.h.bf16 %v2084_v5  ;;  %v3217_v12 = vunpack.c.l.bf16 %v2067_v1 }
  0x25   :  { %1351 = vmatmul.msk.f32.vlgmr.msra.gmra.mxu2 %vm79_vm0, %v1889_v32  ;;  %1352 = vmatmul.msk.f32.vlgmr.msra.gmra.mxu3 %vm79_vm0, %v1889_v32 }
  0x26   :  { %557 = vmatpush.msrb.mxu3 %v257_v14  ;;  %440 = vmatpush.msra.mxu1 %v200_v15  ;;  %v2109_v14 = vld [vmem:[%s3114_s7 + $0xb0] sm:$0xff]   ;;  %v2114_v15 = vld [vmem:[%s3114_s7 + $0xe8] sm:$0xff]  }
  0x27   :  { %1350 = vmatmul.msk.f32.vlgmr.msra.gmra.mxu1 %vm79_vm0, %v1889_v32  ;;  %420 = vmatpush.msra.mxu0 %v199_v17  ;;  %v3128_v17 = vunpack.c.l.bf16 %v2084_v5  ;;  %v3176_v20 = vunpack.c.h.bf16 %v2109_v14 }
  0x28   :  { %558 = vmatpush.msrb.mxu3 %v240_v19  ;;  %1349 = vmatmul.msk.f32.vlgmr.msra.gmra.mxu0 %vm79_vm0, %v1889_v32  ;;  %v3177_v19 = vunpack.c.h.bf16 %v2099_v10 }
  0x29   :  { %497 = vmatpush.msrb.mxu0 %v254_v22  ;;  %517 = vmatpush.msrb.mxu1 %v255_v23  ;;  %v3121_v22 = vunpack.c.h.bf16 %v2114_v15  ;;  %v3186_v23 = vunpack.c.l.bf16 %v2094_v9 }
  0x2a   :  { %559 = vmatpush.msrb.mxu3 %v223_v24  ;;  %537 = vmatpush.msrb.mxu2 %v256_v25  ;;  %v3173_v24 = vunpack.c.l.bf16 %v2099_v10  ;;  %v2153_v25 = vld [vmem:[%s3114_s7 + $0xa8] sm:$0xff]  }
  0x2b   :  { %498 = vmatpush.msrb.mxu0 %v237_v27  ;;  %518 = vmatpush.msrb.mxu1 %v238_v28  ;;  %v3166_v27 = vunpack.c.l.bf16 %v2109_v14  ;;  %v3120_v28 = vunpack.c.l.bf16 %v2114_v15 }
  0x2c   :  { %560 = vmatpush.msrb.mxu3 %v206_v30  ;;  %538 = vmatpush.msrb.mxu2 %v239_v31  ;;  %v3154_v30 = vunpack.c.h.bf16 %v2139_v21  ;;  %v3153_v31 = vunpack.c.h.bf16 %v2153_v25 }
  0x2d   :  { %1356 = vmatmul.msk.f32.vlgmr.msrb.gmra.mxu3 %vm79_vm0, %v1889_v32  ;;  %499 = vmatpush.msrb.mxu0 %v220_v34  ;;  %v2183_v34 = vld [vmem:[%s3114_s7 + $0x60] sm:$0xff]  }
  0x2e   :  { %637 = vmatpush.msra.mxu3 %v261_v36  ;;  %519 = vmatpush.msrb.mxu1 %v221_v37  ;;  %v3145_v37 = vunpack.c.l.bf16 %v2139_v21  ;;  %v3133_v43 = vunpack.c.h.bf16 %v2183_v34 }
  0x2f   :  { %539 = vmatpush.msrb.mxu2 %v222_v39  ;;  %500 = vmatpush.msrb.mxu0 %v203_v40  ;;  %v2202_v39 = vld [vmem:[%s3114_s7 + $0xd8] sm:$0xff]   ;;  %v3144_v40 = vunpack.c.l.bf16 %v2153_v25 }
  0x30   :  { %638 = vmatpush.msra.mxu3 %v244_v41  ;;  %520 = vmatpush.msrb.mxu1 %v204_v42  ;;  %v3118_v41 = vunpack.c.l.bf16 %v2158_v26  ;;  %v3150_v42 = vunpack.c.h.bf16 %v2178_v33 }
  0x31   :  { %540 = vmatpush.msrb.mxu2 %v205_v44  ;;  %1353 = vmatmul.msk.f32.vlgmr.msrb.gmra.mxu0 %vm79_vm0, %v1889_v32  ;;  %v3132_v44 = vunpack.c.h.bf16 %v2197_v38 }
  0x32   :  { %639 = vmatpush.msra.mxu3 %v227_v46  ;;  %1354 = vmatmul.msk.f32.vlgmr.msrb.gmra.mxu1 %vm79_vm0, %v1889_v32  ;;  %v2227_v46 = vld [vmem:[%s3114_s7 + $0x58] sm:$0xff]  }
  0x33   :  { %1355 = vmatmul.msk.f32.vlgmr.msrb.gmra.mxu2 %vm79_vm0, %v1889_v32  ;;  %577 = vmatpush.msra.mxu0 %v258_v47  ;;  %v3117_v47 = vunpack.c.h.bf16 %v2202_v39 }
  0x34   :  { %640 = vmatpush.msra.mxu3 %v210_v49  ;;  %597 = vmatpush.msra.mxu1 %v259_v50  ;;  %v3124_v49 = vunpack.c.l.bf16 %v2183_v34  ;;  %v2241_v50 = vld [vmem:[%s3114_s7 + $0x98] sm:$0xff]  }
  0x35   :  { %1360 = vmatmul.msk.f32.vlgmr.msra.gmra.mxu3 %vm79_vm0, %v1889_v32  ;;  %617 = vmatpush.msra.mxu2 %v260_v52  ;;  %v2246_v52 = vld [vmem:[%s3114_s7 + $0xd0] sm:$0xff]   ;;  %v3126_v57 = vunpack.c.h.bf16 %v2241_v50 }
  0x36   :  { %578 = vmatpush.msra.mxu0 %v241_v54  ;;  %598 = vmatpush.msra.mxu1 %v242_v55  ;;  %v3123_v54 = vunpack.c.l.bf16 %v2202_v39  ;;  %v3127_v55 = vunpack.c.h.bf16 %v2222_v45 }
  0x37   :  { %618 = vmatpush.msra.mxu2 %v243_v56  ;;  %991 = vmatpush.msrb.mxu3 %v3164_v58  ;;  %v3125_v56 = vunpack.c.h.bf16 %v2227_v46 }
  0x38   :  { %579 = vmatpush.msra.mxu0 %v224_v59  ;;  %599 = vmatpush.msra.mxu1 %v225_v60  ;;  %v2266_v59 = vld [vmem:[%s3114_s7 + $0x10] sm:$0xff]  }
  0x39   :  { %619 = vmatpush.msra.mxu2 %v226_v61  ;;  %992 = vmatpush.msrb.mxu3 %v3152_v62  ;;  %v2271_v60 = vld [vmem:[%s3114_s7 + $0x50] sm:$0xff]   ;;  %v3129_v61 = vunpack.c.h.bf16 %v2246_v52 }
  0x3a   :  { %580 = vmatpush.msra.mxu0 %v207_v63  ;;  %600 = vmatpush.msra.mxu1 %v208_v0  ;;  %v3130_v63 = vunpack.c.l.bf16 %v2222_v45  ;;  %v3131_v0 = vunpack.c.l.bf16 %v2227_v46 }
  0x3b   :  { %620 = vmatpush.msra.mxu2 %v209_v3  ;;  %1357 = vmatmul.msk.f32.vlgmr.msra.gmra.mxu0 %vm79_vm0, %v1889_v32  ;;  %v2285_v3 = vld [vmem:[%s3114_s7 + $0x90] sm:$0xff]  }
  0x3c   :  { %1358 = vmatmul.msk.f32.vlgmr.msra.gmra.mxu1 %vm79_vm0, %v1889_v32  ;;  %1359 = vmatmul.msk.f32.vlgmr.msra.gmra.mxu2 %vm79_vm0, %v1889_v32  ;;  %v2134_v32 = vld [vmem:[%s3114_s7 + $0x28] sm:$0xff]  }
  0x3d   :  { %931 = vmatpush.msrb.mxu0 %v3218_v6  ;;  %951 = vmatpush.msrb.mxu1 %v3212_v7  ;;  %v3174_v29 = vunpack.c.h.bf16 %v2134_v32  ;;  %v3162_v36 = vunpack.c.l.bf16 %v2134_v32 }
  0x3e   :  { %971 = vmatpush.msrb.mxu2 %v3211_v8  ;;  %993 = vmatpush.msrb.mxu3 %v3140_v11  ;;  %v2373_v11 = vld [vmem:[%s3114_s7 + $0x80] sm:$0xff]  }
  0x3f   :  { %932 = vmatpush.msrb.mxu0 %v3217_v12  ;;  %952 = vmatpush.msrb.mxu1 %v3205_v13 }
  0x40   :  { %972 = vmatpush.msrb.mxu2 %v3187_v16  ;;  %994 = vmatpush.msrb.mxu3 %v3128_v17  ;;  %v2329_v17 = vld [vmem:[%s3114_s7 + $0x88] sm:$0xff]  }
  0x41   :  { %933 = vmatpush.msrb.mxu0 %v3206_v18  ;;  %953 = vmatpush.msrb.mxu1 %v3177_v19 }
  0x42   :  { %973 = vmatpush.msrb.mxu2 %v3176_v20  ;;  %995 = vmatpush.msrb.mxu3 %v3121_v22  ;;  %v3137_v22 = vunpack.c.h.bf16 %v2271_v60 }
  0x43   :  { %934 = vmatpush.msrb.mxu0 %v3186_v23  ;;  %954 = vmatpush.msrb.mxu1 %v3173_v24  ;;  %v2496_v24 = vld [vmem:[%s3114_s7 + $0x1a8] sm:$0xff]  }
  0x44   :  { %974 = vmatpush.msrb.mxu2 %v3166_v27  ;;  %996 = vmatpush.msrb.mxu3 %v3120_v28  ;;  %v3136_v28 = vunpack.c.h.bf16 %v2266_v59  ;;  %v3195_v23 = vunpack.c.l.bf16 %v2496_v24 }
  0x45   :  { %935 = vmatpush.msrb.mxu0 %v3174_v29  ;;  %955 = vmatpush.msrb.mxu1 %v3154_v30  ;;  %v3170_v30 = vunpack.c.l.bf16 %v2373_v11 }
  0x46   :  { %975 = vmatpush.msrb.mxu2 %v3153_v31  ;;  %997 = vmatpush.msrb.mxu3 %v3119_v35  ;;  %v3135_v35 = vunpack.c.l.bf16 %v2246_v52 }
  0x47   :  { %936 = vmatpush.msrb.mxu0 %v3162_v36  ;;  %956 = vmatpush.msrb.mxu1 %v3145_v37 }
  0x48   :  { %976 = vmatpush.msrb.mxu2 %v3144_v40  ;;  %998 = vmatpush.msrb.mxu3 %v3118_v41  ;;  %v3134_v41 = vunpack.c.l.bf16 %v2241_v50 }
  0x49   :  { %937 = vmatpush.msrb.mxu0 %v3150_v42  ;;  %957 = vmatpush.msrb.mxu1 %v3133_v43 }
  0x4a   :  { %977 = vmatpush.msrb.mxu2 %v3132_v44  ;;  %999 = vmatpush.msrb.mxu3 %v3117_v47  ;;  %v2290_v47 = vld [vmem:[%s3114_s7 + $0xc8] sm:$0xff]  }
  0x4b   :  { %938 = vmatpush.msrb.mxu0 %v3139_v48  ;;  %958 = vmatpush.msrb.mxu1 %v3124_v49  ;;  %v2315_v49 = vld [vmem:[%s3114_s7 + $0x48] sm:$0xff]  }
  0x4c   :  { %978 = vmatpush.msrb.mxu2 %v3122_v53  ;;  %1000 = vmatpush.msrb.mxu3 %v3123_v54  ;;  %v3138_v53 = vunpack.c.h.bf16 %v2285_v3  ;;  %v2310_v54 = vld [vmem:[%s3114_s7 + $0x8] sm:$0xff]   ;;  %v3149_v43 = vunpack.c.h.bf16 %v2315_v49  ;;  %v3156_v48 = vunpack.c.l.bf16 %v2315_v49 }
  0x4d   :  { %939 = vmatpush.msrb.mxu0 %v3127_v55  ;;  %959 = vmatpush.msrb.mxu1 %v3125_v56  ;;  %v3141_v56 = vunpack.c.h.bf16 %v2290_v47  ;;  %v3143_v55 = vunpack.c.l.bf16 %v2271_v60  ;;  %v3148_v44 = vunpack.c.h.bf16 %v2310_v54 }
  0x4e   :  { %979 = vmatpush.msrb.mxu2 %v3126_v57  ;;  %1001 = vmatpush.msrb.mxu3 %v3129_v61  ;;  %v3142_v57 = vunpack.c.l.bf16 %v2266_v59  ;;  %v2334_v61 = vld [vmem:[%s3114_s7 + $0xc0] sm:$0xff]  }
  0x4f   :  { %940 = vmatpush.msrb.mxu0 %v3130_v63  ;;  %960 = vmatpush.msrb.mxu1 %v3131_v0  ;;  %v3146_v63 = vunpack.c.l.bf16 %v2285_v3  ;;  %v3147_v0 = vunpack.c.l.bf16 %v2290_v47 }
  0x50   :  { %980 = vmatpush.msrb.mxu2 %v3134_v41  ;;  %1002 = vmatpush.msrb.mxu3 %v3135_v35  ;;  %v3151_v41 = vunpack.c.h.bf16 %v2329_v17  ;;  %v2354_v35 = vld [vmem:[%s3114_s7] sm:$0xff]  }
  0x51   :  { %941 = vmatpush.msrb.mxu0 %v3136_v28  ;;  %961 = vmatpush.msrb.mxu1 %v3137_v22  ;;  %v2359_v28 = vld [vmem:[%s3114_s7 + $0x40] sm:$0xff]   ;;  %v3155_v22 = vunpack.c.h.bf16 %v2334_v61  ;;  %v3161_v40 = vunpack.c.h.bf16 %v2354_v35 }
  0x52   :  { %981 = vmatpush.msrb.mxu2 %v3138_v53  ;;  %1003 = vmatpush.msrb.mxu3 %v3141_v56  ;;  %v3158_v53 = vunpack.c.l.bf16 %v2310_v54  ;;  %v2378_v56 = vld [vmem:[%s3114_s7 + $0x1f8] sm:$0xff]   ;;  %v3160_v37 = vunpack.c.h.bf16 %v2359_v28  ;;  %v3167_v62 = vunpack.c.l.bf16 %v2359_v28 }
  0x53   :  { %942 = vmatpush.msrb.mxu0 %v3142_v57  ;;  %962 = vmatpush.msrb.mxu1 %v3143_v55  ;;  %v3157_v57 = vunpack.c.l.bf16 %v2329_v17  ;;  %v3159_v55 = vunpack.c.l.bf16 %v2334_v61  ;;  %v3165_v42 = vunpack.c.h.bf16 %v2378_v56  ;;  %v3178_v36 = vunpack.c.l.bf16 %v2378_v56 }
  0x54   :  { %982 = vmatpush.msrb.mxu2 %v3146_v63  ;;  %1004 = vmatpush.msrb.mxu3 %v3147_v0  ;;  %v2395_v63 = vld [vmem:[%s3114_s7 + $0x138] sm:$0xff]   ;;  %v3163_v0 = vunpack.c.h.bf16 %v2373_v11 }
  0x55   :  { %943 = vmatpush.msrb.mxu0 %v3148_v44  ;;  %963 = vmatpush.msrb.mxu1 %v3149_v43  ;;  %v2403_v44 = vld [vmem:[%s3114_s7 + $0x178] sm:$0xff]   ;;  %v3169_v31 = vunpack.c.h.bf16 %v2395_v63 }
  0x56   :  { %983 = vmatpush.msrb.mxu2 %v3151_v41  ;;  %v2408_v43 = vld [vmem:[%s3114_s7 + $0x1b8] sm:$0xff]   ;;  %1005 = vmatpush.msrb.mxu3 %v3155_v22  ;;  %v3168_v41 = vunpack.c.l.bf16 %v2354_v35  ;;  %v3171_v22 = vunpack.c.h.bf16 %v2403_v44 }
  0x57   :  { %944 = vmatpush.msrb.mxu0 %v3158_v53  ;;  %964 = vmatpush.msrb.mxu1 %v3156_v48  ;;  %v3172_v48 = vunpack.c.h.bf16 %v2408_v43  ;;  %v2439_v53 = vld [vmem:[%s3114_s7 + $0x1f0] sm:$0xff]   ;;  %v3179_v58 = vunpack.c.l.bf16 %v2408_v43 }
  0x58   :  { %984 = vmatpush.msrb.mxu2 %v3157_v57  ;;  %1006 = vmatpush.msrb.mxu3 %v3159_v55  ;;  %v2434_v57 = vld [vmem:[%s3114_s7 + $0x130] sm:$0xff]   ;;  %3284 = vst [vmem:[#allocation11_spill] sm:$0xff] %v2439_v53  ;;  %v3175_v55 = vunpack.c.l.bf16 %v2395_v63  ;;  %v3182_v27 = vunpack.c.h.bf16 %v2439_v53  ;;  %v3188_v29 = vunpack.c.l.bf16 %v2439_v53 }
  0x59   :  { %945 = vmatpush.msrb.mxu0 %v3161_v40  ;;  %965 = vmatpush.msrb.mxu1 %v3160_v37  ;;  %v2447_v37 = vld [vmem:[%s3114_s7 + $0x170] sm:$0xff]  }
  0x5a   :  { %985 = vmatpush.msrb.mxu2 %v3163_v0  ;;  %v2452_v40 = vld [vmem:[%s3114_s7 + $0x1b0] sm:$0xff]   ;;  %1071 = vmatpush.msra.mxu3 %v3165_v42  ;;  %v3180_v0 = vunpack.c.l.bf16 %v2403_v44  ;;  %v3181_v42 = vunpack.c.h.bf16 %v2434_v57 }
  0x5b   :  { %946 = vmatpush.msrb.mxu0 %v3168_v41  ;;  %966 = vmatpush.msrb.mxu1 %v3167_v62  ;;  %v3183_v62 = vunpack.c.h.bf16 %v2447_v37  ;;  %v3184_v41 = vunpack.c.h.bf16 %v2452_v40  ;;  %v3189_v20 = vunpack.c.l.bf16 %v2452_v40 }
  0x5c   :  { %986 = vmatpush.msrb.mxu2 %v3170_v30  ;;  %v2483_v30 = vld [vmem:[%s3114_s7 + $0x1e8] sm:$0xff]   ;;  %1072 = vmatpush.msra.mxu3 %v3178_v36 }
  0x5d   :  { %1011 = vmatpush.msra.mxu0 %v3169_v31  ;;  %1031 = vmatpush.msra.mxu1 %v3171_v22  ;;  %v2478_v31 = vld [vmem:[%s3114_s7 + $0x128] sm:$0xff]   ;;  %3285 = vst [vmem:[#allocation12_spill] sm:$0xff] %v2483_v30  ;;  %v3185_v22 = vunpack.c.l.bf16 %v2434_v57  ;;  %v3191_v36 = vunpack.c.h.bf16 %v2483_v30 }
  0x5e   :  { %1051 = vmatpush.msra.mxu2 %v3172_v48  ;;  %v2491_v48 = vld [vmem:[%s3114_s7 + $0x168] sm:$0xff]   ;;  %v3194_v19 = vunpack.c.h.bf16 %v2478_v31  ;;  %1073 = vmatpush.msra.mxu3 %v3182_v27  ;;  %v3204_v27 = vunpack.c.l.bf16 %v2478_v31 }
  0x5f   :  { %1012 = vmatpush.msra.mxu0 %v3175_v55  ;;  %1032 = vmatpush.msra.mxu1 %v3180_v0  ;;  %v3190_v55 = vunpack.c.l.bf16 %v2447_v37  ;;  %v3192_v0 = vunpack.c.h.bf16 %v2496_v24 }
  0x60   :  { %1052 = vmatpush.msra.mxu2 %v3179_v58  ;;  %v3193_v58 = vunpack.c.h.bf16 %v2491_v48  ;;  %1074 = vmatpush.msra.mxu3 %v3188_v29 }
  0x61   :  { %1013 = vmatpush.msra.mxu0 %v3181_v42  ;;  %1033 = vmatpush.msra.mxu1 %v3183_v62  ;;  %v2522_v42 = vld [vmem:[%s3114_s7 + $0x120] sm:$0xff]  }
  0x62   :  { %1053 = vmatpush.msra.mxu2 %v3184_v41  ;;  %3286 = vst [vmem:[#allocation13_spill] sm:$0xff] %v2522_v42  ;;  %v2530_v62 = vld [vmem:[%s3114_s7 + $0x160] sm:$0xff]   ;;  %v3203_v16 = vunpack.c.h.bf16 %v2522_v42  ;;  %1075 = vmatpush.msra.mxu3 %v3191_v36  ;;  %v3199_v36 = vunpack.c.l.bf16 %v2522_v42 }
  0x63   :  { %1014 = vmatpush.msra.mxu0 %v3185_v22  ;;  %3287 = vst [vmem:[#allocation14_spill] sm:$0xff] %v2530_v62  ;;  %v2535_v41 = vld [vmem:[%s3114_s7 + $0x1a0] sm:$0xff]   ;;  %1034 = vmatpush.msra.mxu1 %v3190_v55  ;;  %v3202_v22 = vunpack.c.l.bf16 %v2491_v48  ;;  %v3197_v29 = vunpack.c.h.bf16 %v2530_v62  ;;  %v2559_v55 = vld [vmem:[%s3114_s7 + $0x118] sm:$0xff]  }
  0x64   :  { %3288 = vst [vmem:[#allocation15_spill] sm:$0xff] %v2535_v41  ;;  %1054 = vmatpush.msra.mxu2 %v3189_v20  ;;  %v3196_v20 = vunpack.c.h.bf16 %v2535_v41 }
  0x65   :  { %1015 = vmatpush.msra.mxu0 %v3194_v19  ;;  %1035 = vmatpush.msra.mxu1 %v3193_v58  ;;  %3289 = vst [vmem:[#allocation16_spill] sm:$0xff] %v2559_v55  ;;  %v3200_v58 = vunpack.c.l.bf16 %v2535_v41  ;;  %v3201_v19 = vunpack.c.h.bf16 %v2559_v55 }
  0x66   :  { %1055 = vmatpush.msra.mxu2 %v3192_v0  ;;  %v3198_v0 = vunpack.c.l.bf16 %v2530_v62 }
  0x67   :  { %1016 = vmatpush.msra.mxu0 %v3204_v27  ;;  %1036 = vmatpush.msra.mxu1 %v3202_v22  ;;  %v2607_v22 = vld [vmem:[%s3114_s7 + $0x1e0] sm:$0xff]  }
  0x68   :  { %1056 = vmatpush.msra.mxu2 %v3195_v23  ;;  %v2588_v23 = vld [vmem:[%s3114_s7 + $0x158] sm:$0xff]   ;;  %3293 = vst [vmem:[#allocation20_spill] sm:$0xff] %v2607_v22  ;;  %v3216_v18 = vunpack.c.h.bf16 %v2607_v22  ;;  %v3222_v7 = vunpack.c.l.bf16 %v2607_v22 }
  0x69   :  { %1017 = vmatpush.msra.mxu0 %v3203_v16  ;;  %1037 = vmatpush.msra.mxu1 %v3197_v29  ;;  %3290 = vst [vmem:[#allocation17_spill] sm:$0xff] %v2588_v23  ;;  %v3207_v29 = vunpack.c.l.bf16 %v2559_v55  ;;  %v3214_v27 = vunpack.c.l.bf16 %v2588_v23 }
  0x6a   :  { %1057 = vmatpush.msra.mxu2 %v3196_v20  ;;  %v2593_v20 = vld [vmem:[%s3114_s7 + $0x198] sm:$0xff]  }
  0x6b   :  { %1018 = vmatpush.msra.mxu0 %v3199_v36  ;;  %1038 = vmatpush.msra.mxu1 %v3198_v0  ;;  %3291 = vst [vmem:[#allocation18_spill] sm:$0xff] %v2593_v20  ;;  %v3208_v0 = vunpack.c.h.bf16 %v2588_v23  ;;  %v3210_v36 = vunpack.c.h.bf16 %v2593_v20  ;;  %v3215_v13 = vunpack.c.l.bf16 %v2593_v20 }
  0x6c   :  { %1058 = vmatpush.msra.mxu2 %v3200_v58  ;;  %v3209_v58 = vunpack.c.l.bf16 %v2483_v30 }
  0x6d   :  { %1019 = vmatpush.msra.mxu0 %v3201_v19  ;;  %v2602_v19 = vld [vmem:[%s3114_s7 + $0x110] sm:$0xff]   ;;  %1039 = vmatpush.msra.mxu1 %v3208_v0 }
  0x6e   :  { %3292 = vst [vmem:[#allocation19_spill] sm:$0xff] %v2602_v19  ;;  %v3213_v16 = vunpack.c.h.bf16 %v2602_v19  ;;  %1059 = vmatpush.msra.mxu2 %v3210_v36  ;;  %1076 = vmatpush.msra.mxu3 %v3209_v58  ;;  %v2629_v0 = vld [vmem:[%s3114_s7 + $0x190] sm:$0xff]   ;;  %v3219_v58 = vunpack.c.l.bf16 %v2602_v19 }
  0x6f   :  { %1020 = vmatpush.msra.mxu0 %v3207_v29  ;;  %v2624_v29 = vld [vmem:[%s3114_s7 + $0x150] sm:$0xff]   ;;  %3295 = vst [vmem:[#allocation22_spill] sm:$0xff] %v2629_v0  ;;  %1040 = vmatpush.msra.mxu1 %v3214_v27  ;;  %v3221_v8 = vunpack.c.h.bf16 %v2629_v0  ;;  %v2651_v27 = vld [vmem:[%s3114_s7 + $0x1d8] sm:$0xff]   ;;  %v3300_v22 = vunpack.c.l.bf16 %v2629_v0 }
  0x70   :  { %3294 = vst [vmem:[#allocation21_spill] sm:$0xff] %v2624_v29  ;;  %v3220_v36 = vunpack.c.h.bf16 %v2624_v29  ;;  %1060 = vmatpush.msra.mxu2 %v3215_v13  ;;  %1077 = vmatpush.msra.mxu3 %v3216_v18  ;;  %v3228_v18 = vunpack.c.l.bf16 %v2624_v29  ;;  %v3301_v19 = vunpack.c.h.bf16 %v2651_v27  ;;  %v3305_v29 = vunpack.c.l.bf16 %v2651_v27 }
  0x71   :  { %1021 = vmatpush.msra.mxu0 %v3213_v16  ;;  %v2646_v16 = vld [vmem:[%s3114_s7 + $0x108] sm:$0xff]   ;;  %3297 = vst [vmem:[#allocation24_spill] sm:$0xff] %v2651_v27 }
  0x72   :  { %3296 = vst [vmem:[#allocation23_spill] sm:$0xff] %v2646_v16  ;;  %1041 = vmatpush.msra.mxu1 %v3220_v36  ;;  %v3227_v13 = vunpack.c.h.bf16 %v2646_v16  ;;  %1061 = vmatpush.msra.mxu2 %v3221_v8  ;;  %v2673_v36 = vld [vmem:[%s3114_s7 + $0x188] sm:$0xff]   ;;  %v3233_v8 = vunpack.c.l.bf16 %v2646_v16 }
  0x73   :  { %1022 = vmatpush.msra.mxu0 %v3219_v58  ;;  %1078 = vmatpush.msra.mxu3 %v3222_v7  ;;  %v2668_v58 = vld [vmem:[%s3114_s7 + $0x148] sm:$0xff]   ;;  %3299 = vst [vmem:[#allocation26_spill] sm:$0xff] %v2673_v36  ;;  %v3304_v0 = vunpack.c.h.bf16 %v2673_v36  ;;  %v3308_v27 = vunpack.c.l.bf16 %v2673_v36 }
  0x74   :  { %3298 = vst [vmem:[#allocation25_spill] sm:$0xff] %v2668_v58  ;;  %1042 = vmatpush.msra.mxu1 %v3228_v18  ;;  %v3234_v7 = vunpack.c.h.bf16 %v2668_v58  ;;  %1062 = vmatpush.msra.mxu2 %v3300_v22  ;;  %v2695_v18 = vld [vmem:[%s3114_s7 + $0x1d0] sm:$0xff]  }
  0x75   :  { %1023 = vmatpush.msra.mxu0 %v3227_v13  ;;  %1079 = vmatpush.msra.mxu3 %v3301_v19  ;;  %v2690_v13 = vld [vmem:[%s3114_s7 + $0x100] sm:$0xff]   ;;  %3303 = vst [vmem:[#allocation28_spill] sm:$0xff] %v2695_v18  ;;  %v3240_v19 = vunpack.c.l.bf16 %v2668_v58  ;;  %v3309_v16 = vunpack.c.h.bf16 %v2695_v18 }
  0x76   :  { %3302 = vst [vmem:[#allocation27_spill] sm:$0xff] %v2690_v13  ;;  %1043 = vmatpush.msra.mxu1 %v3234_v7  ;;  %v3239_v22 = vunpack.c.h.bf16 %v2690_v13  ;;  %1063 = vmatpush.msra.mxu2 %v3304_v0  ;;  %v2717_v7 = vld [vmem:[%s3114_s7 + $0x180] sm:$0xff]   ;;  %v3242_v0 = vunpack.c.l.bf16 %v2690_v13 }
  0x77   :  { %1024 = vmatpush.msra.mxu0 %v3233_v8  ;;  %1080 = vmatpush.msra.mxu3 %v3305_v29  ;;  %v2712_v8 = vld [vmem:[%s3114_s7 + $0x140] sm:$0xff]   ;;  %3307 = vst [vmem:[#allocation30_spill] sm:$0xff] %v2717_v7  ;;  %v3248_v6 = vunpack.c.h.bf16 %v2717_v7  ;;  %v3243_v12 = vunpack.c.l.bf16 %v2717_v7  ;;  %v3283_v7 = vstv %s2767_s28 }
  0x78   :  { %3306 = vst [vmem:[#allocation29_spill] sm:$0xff] %v2712_v8  ;;  %1044 = vmatpush.msra.mxu1 %v3240_v19  ;;  %v3241_v29 = vunpack.c.h.bf16 %v2712_v8  ;;  %1064 = vmatpush.msra.mxu2 %v3308_v27  ;;  %v3246_v19 = vunpack.c.l.bf16 %v2712_v8  ;;  %v262_v13 = vld [vmem:[%s3113_s6] sm:$0xff] }
  0x79   :  { %1025 = vmatpush.msra.mxu0 %v3239_v22  ;;  %1081 = vmatpush.msra.mxu3 %v3309_v16  ;;  %v2734_v22 = vld [vmem:[%s3114_s7 + $0x1c8] sm:$0xff]   ;;  %v3311_v16 = vunpack.c.l.bf16 %v2695_v18  ;;  %v268_v58 = vperm.slane %v262_v13, 0  ;;  %v269_v55 = vperm.slane %v262_v13, 1  ;;  %v270_v41 = vperm.slane %v262_v13, 2 }
  0x7a   :  { %3310 = vst [vmem:[#allocation31_spill] sm:$0xff] %v2734_v22  ;;  %1045 = vmatpush.msra.mxu1 %v3241_v29  ;;  %v3245_v27 = vunpack.c.h.bf16 %v2734_v22  ;;  %1065 = vmatpush.msra.mxu2 %v3248_v6  ;;  %v3244_v29 = vunpack.c.l.bf16 %v2734_v22  ;;  %v3282_v6 = vstv %s2765_s27 }
  0x7b   :  { %1026 = vmatpush.msra.mxu0 %v3242_v0  ;;  %1082 = vmatpush.msra.mxu3 %v3311_v16  ;;  %v2757_v0 = vld [vmem:[%s3114_s7 + $0x1c0] sm:$0xff]  }
  0x7c   :  { %1046 = vmatpush.msra.mxu1 %v3246_v19  ;;  %1066 = vmatpush.msra.mxu2 %v3243_v12  ;;  %3312 = vst [vmem:[#allocation32_spill] sm:$0xff] %v2757_v0  ;;  %v3247_v16 = vunpack.c.h.bf16 %v2757_v0  ;;  %v3261_v12 = vunpack.c.l.bf16 %v2757_v0 }
  0x7d   :  { %1083 = vmatpush.msra.mxu3 %v3245_v27 }
  0x7f   :  { %1084 = vmatpush.msra.mxu3 %v3244_v29  ;;  %v71_v29 = vld [vmem:[%s3111_s4] sm:$0x7] }
  0x80   :  { %v73_v27 = vperm.slane %v71_v29, 0  ;;  %v74_v19 = vperm.slane %v71_v29, 1  ;;  %v75_v36 = vperm.slane %v71_v29, 2 }
  0x81   :  { %1085 = vmatpush.msra.mxu3 %v3247_v16 }
  0x83   :  { %1086 = vmatpush.msra.mxu3 %v3261_v12 }
  0x8f   :  { %v100_v16 = vpop.f32.mrf.mxu0  ;;  %v120_v22 = vpop.f32.mrf.mxu1 }
  0x90   :  { %v101_v8 = vadd.f32 %v100_v16, %v73_v27  ;;  %v121_v18 = vadd.f32 %v120_v22, %v74_v19 }
  0x92   :  { %v154_v0 = vmul.f32 %v3282_v6, %v101_v8  ;;  %v155_v12 = vmul.f32 %v3283_v7, %v121_v18 }
  0x94   :  { %v2783_v20 = vadd.f32 %v155_v12, %v154_v0  ;;  %v271_v12 = vperm.slane %v262_v13, 3  ;;  %v272_v0 = vperm.slane %v262_v13, 4 }
  0x96   :  { %v140_v23 = vpop.f32.mrf.mxu2  ;;  %v322_v30 = vpop.f32.mrf.mxu3 }
  0x97   :  { %v2785_v62 = vadd.f32 %v140_v23, %v75_v36  ;;  %v323_v27 = vadd.f32 %v322_v30, %v268_v58  ;;  %v3313_v23 = vunpack.c.h.bf16 %v2067_v1 }
  0x99   :  { %v915_v22 = vsub.f32 %v2783_v20, %v323_v27  ;;  %v342_v19 = vpop.f32.mrf.mxu0  ;;  %v362_v16 = vpop.f32.mrf.mxu1  ;;  %v3316_v27 = vunpack.c.h.bf16 %v2077_v4 }
  0x9a   :  { %v343_v53 = vadd.f32 %v342_v19, %v269_v55  ;;  %v363_v42 = vadd.f32 %v362_v16, %v270_v41  ;;  %v3314_v41 = vunpack.c.l.bf16 %v2067_v1  ;;  %v3317_v16 = vunpack.c.h.bf16 %v2094_v9 }
  0x9b   :  { %v923_v8 = vmul.f32 %v915_v22, %v915_v22  ;;  %v3319_v1 = vunpack.c.l.bf16 %v2077_v4 }
  0x9c   :  { %v916_v18 = vsub.f32 %v2783_v20, %v343_v53  ;;  %v917_v29 = vsub.f32 %v2783_v20, %v363_v42  ;;  %v3315_v53 = vunpack.c.h.bf16 %v2072_v2  ;;  %v274_v42 = vperm.slane %v262_v13, 6 }
  0x9d   :  { %947 = vmatmul.f32.vlgmr.msrb.gmra.mxu0 %v923_v8 }
  0x9e   :  { %v924_v6 = vmul.f32 %v916_v18, %v916_v18  ;;  %v925_v7 = vmul.f32 %v917_v29, %v917_v29  ;;  %1128 = vmatpush.msrb.mxu0 %v3313_v23 }
  0xa0   :  { %v382_v58 = vpop.f32.mrf.mxu2  ;;  %v402_v30 = vpop.f32.mrf.mxu3  ;;  %967 = vmatmul.f32.vlgmr.msrb.gmra.mxu1 %v924_v6  ;;  %987 = vmatmul.f32.vlgmr.msrb.gmra.mxu2 %v925_v7  ;;  %v3318_v6 = vunpack.c.l.bf16 %v2072_v2  ;;  %v273_v7 = vperm.slane %v262_v13, 5 }
  0xa1   :  { %v383_v36 = vadd.f32 %v382_v58, %v271_v12  ;;  %v403_v55 = vadd.f32 %v402_v30, %v272_v0  ;;  %1129 = vmatpush.msrb.mxu0 %v3314_v41  ;;  %1148 = vmatpush.msrb.mxu1 %v3315_v53  ;;  %v3320_v12 = vunpack.c.l.bf16 %v2094_v9  ;;  %v3321_v0 = vunpack.c.h.bf16 %v2099_v10 }
  0xa2   :  { %1168 = vmatpush.msrb.mxu2 %v3316_v27  ;;  %v275_v58 = vperm.slane %v262_v13, 7  ;;  %v3324_v9 = vunpack.c.l.bf16 %v2099_v10  ;;  %v3326_v13 = vunpack.c.h.bf16 %v2043_v51  ;;  %v3329_v10 = vunpack.c.h.bf16 %v2153_v25 }
  0xa3   :  { %v918_v22 = vsub.f32 %v2783_v20, %v383_v36  ;;  %v919_v19 = vsub.f32 %v2783_v20, %v403_v55  ;;  %1130 = vmatpush.msrb.mxu0 %v3317_v16  ;;  %1149 = vmatpush.msrb.mxu1 %v3318_v6  ;;  %v3322_v36 = vunpack.c.h.bf16 %v2109_v14  ;;  %v3323_v55 = vunpack.c.h.bf16 %v2134_v32 }
  0xa4   :  { %1169 = vmatpush.msrb.mxu2 %v3319_v1  ;;  %v442_v8 = vpop.f32.mrf.mxu1  ;;  %v3328_v16 = vunpack.c.h.bf16 %v2139_v21  ;;  %v3331_v1 = vunpack.c.h.bf16 %v2178_v33 }
  0xa5   :  { %v926_v18 = vmul.f32 %v918_v22, %v918_v22  ;;  %v927_v29 = vmul.f32 %v919_v19, %v919_v19  ;;  %1131 = vmatpush.msrb.mxu0 %v3320_v12  ;;  %1150 = vmatpush.msrb.mxu1 %v3321_v0  ;;  %v443_v23 = vadd.f32 %v442_v8, %v274_v42  ;;  %v422_v30 = vpop.f32.mrf.mxu0  ;;  %v3325_v42 = vunpack.c.l.bf16 %v2109_v14 }
  0xa6   :  { %1170 = vmatpush.msrb.mxu2 %v3322_v36  ;;  %v423_v4 = vadd.f32 %v422_v30, %v273_v7  ;;  %v3327_v19 = vunpack.c.l.bf16 %v2134_v32  ;;  %v3330_v7 = vunpack.c.l.bf16 %v2043_v51  ;;  %v3332_v8 = vunpack.c.l.bf16 %v2139_v21 }
  0xa7   :  { %v921_v2 = vsub.f32 %v2783_v20, %v443_v23  ;;  %1007 = vmatmul.f32.vlgmr.msrb.gmra.mxu3 %v926_v18  ;;  %1027 = vmatmul.f32.vlgmr.msra.gmra.mxu0 %v927_v29  ;;  %v3333_v18 = vunpack.c.l.bf16 %v2153_v25  ;;  %v3334_v29 = vunpack.c.h.bf16 %v2084_v5  ;;  %v3335_v12 = vunpack.c.l.bf16 %v2178_v33  ;;  %v2854_v33 = vld [vmem:[%s3113_s6 + $0x8] sm:$0xff] }
  0xa8   :  { %1132 = vmatpush.msrb.mxu0 %v3323_v55  ;;  %1151 = vmatpush.msrb.mxu1 %v3324_v9  ;;  %v462_v41 = vpop.f32.mrf.mxu2  ;;  %v482_v53 = vpop.f32.mrf.mxu3  ;;  %v920_v14 = vsub.f32 %v2783_v20, %v423_v4  ;;  %v3336_v0 = vunpack.c.h.bf16 %v2183_v34  ;;  %v3337_v23 = vunpack.c.h.bf16 %v2197_v38  ;;  %v3338_v21 = vunpack.c.l.bf16 %v2084_v5 }
  0xa9   :  { %1171 = vmatpush.msrb.mxu2 %v3325_v42  ;;  %1188 = vmatpush.msrb.mxu3 %v3326_v13  ;;  %v463_v27 = vadd.f32 %v462_v41, %v275_v58  ;;  %v929_v22 = vmul.f32 %v921_v2, %v921_v2  ;;  %v3339_v25 = vunpack.c.h.bf16 %v2222_v45  ;;  %v3340_v30 = vunpack.c.l.bf16 %v2183_v34  ;;  %v1688_v41 = vld [vmem:[%s3113_s6 + $0x10] ss:$0 sm:$0xff]  ;;  %s1764_s6 = smov 120  }
  0xaa   :  { %1133 = vmatpush.msrb.mxu0 %v3327_v19  ;;  %1152 = vmatpush.msrb.mxu1 %v3328_v16  ;;  %v928_v51 = vmul.f32 %v920_v14, %v920_v14  ;;  %v3341_v36 = vunpack.c.l.bf16 %v2197_v38  ;;  %v3342_v5 = vunpack.c.h.bf16 %v2114_v15  ;;  %v3343_v2 = vunpack.c.l.bf16 %v2222_v45 }
  0xab   :  { %v922_v6 = vsub.f32 %v2783_v20, %v463_v27  ;;  %1172 = vmatpush.msrb.mxu2 %v3329_v10  ;;  %1189 = vmatpush.msrb.mxu3 %v3330_v7  ;;  %v276_v4 = vperm.slane %v2854_v33, 0  ;;  %v3344_v55 = vunpack.c.h.bf16 %v2227_v46  ;;  %v3345_v9 = vunpack.c.h.bf16 %v2241_v50 }
  0xac   :  { %1134 = vmatpush.msrb.mxu0 %v3331_v1  ;;  %1153 = vmatpush.msrb.mxu1 %v3332_v8  ;;  %v3346_v34 = vunpack.c.l.bf16 %v2114_v15  ;;  %v3347_v38 = vunpack.c.h.bf16 %v2266_v59  ;;  %v277_v45 = vperm.slane %v2854_v33, 1  ;;  %v278_v42 = vperm.slane %v2854_v33, 2 }
  0xad   :  { %v930_v32 = vmul.f32 %v922_v6, %v922_v6  ;;  %1173 = vmatpush.msrb.mxu2 %v3333_v18  ;;  %1190 = vmatpush.msrb.mxu3 %v3334_v29  ;;  %v3348_v13 = vunpack.c.l.bf16 %v2227_v46  ;;  %v3349_v27 = vunpack.c.l.bf16 %v2241_v50  ;;  %v3350_v19 = vunpack.c.h.bf16 %v2158_v26 }
  0xae   :  { %1067 = vmatmul.f32.vlgmr.msra.gmra.mxu2 %v929_v22  ;;  %1135 = vmatpush.msrb.mxu0 %v3335_v12  ;;  %v502_v22 = vpop.f32.mrf.mxu0  ;;  %v3351_v16 = vunpack.c.l.bf16 %v2266_v59  ;;  %v483_v6 = vadd.f32 %v482_v53, %v276_v4  ;;  %v3352_v10 = vunpack.c.h.bf16 %v2271_v60  ;;  %v3353_v7 = vunpack.c.h.bf16 %v2285_v3 }
  0xaf   :  { %1154 = vmatpush.msrb.mxu1 %v3336_v0  ;;  %1174 = vmatpush.msrb.mxu2 %v3337_v23  ;;  %v522_v15 = vpop.f32.mrf.mxu1  ;;  %v3354_v14 = vunpack.c.l.bf16 %v2158_v26  ;;  %v3355_v50 = vunpack.c.h.bf16 %v2310_v54  ;;  %v503_v8 = vadd.f32 %v502_v22, %v277_v45  ;;  %v3356_v59 = vunpack.c.l.bf16 %v2271_v60 }
  0xb0   :  { %1191 = vmatpush.msrb.mxu3 %v3338_v21  ;;  %1136 = vmatpush.msrb.mxu0 %v3339_v25  ;;  %v2849_v58 = vpop.f32.mrf.mxu3  ;;  %v3357_v53 = vunpack.c.l.bf16 %v2285_v3  ;;  %v3358_v18 = vunpack.c.h.bf16 %v2202_v39  ;;  %v3359_v26 = vunpack.c.l.bf16 %v2310_v54  ;;  %v1112_v29 = vsub.f32 %v2783_v20, %v483_v6 }
  0xb1   :  { %1087 = vmatmul.f32.vlgmr.msra.gmra.mxu3 %v930_v32  ;;  %1155 = vmatpush.msrb.mxu1 %v3340_v30  ;;  %v523_v32 = vadd.f32 %v522_v15, %v278_v42  ;;  %v3360_v12 = vunpack.c.h.bf16 %v2315_v49  ;;  %v279_v3 = vperm.slane %v2854_v33, 3  ;;  %v1113_v0 = vsub.f32 %v2783_v20, %v503_v8 }
  0xb2   :  { %1175 = vmatpush.msrb.mxu2 %v3341_v36  ;;  %1192 = vmatpush.msrb.mxu3 %v3342_v5  ;;  %v3362_v21 = vunpack.c.l.bf16 %v2202_v39  ;;  %v3363_v54 = vunpack.c.h.bf16 %v2354_v35  ;;  %v3364_v36 = vunpack.c.l.bf16 %v2315_v49  ;;  %v3365_v5 = vunpack.c.l.bf16 %v2329_v17 }
  0xb3   :  { %1047 = vmatmul.f32.vlgmr.msra.gmra.mxu1 %v928_v51  ;;  %1137 = vmatpush.msrb.mxu0 %v3343_v2  ;;  %v3361_v51 = vunpack.c.h.bf16 %v2329_v17  ;;  %v1114_v23 = vsub.f32 %v2783_v20, %v523_v32  ;;  %v3366_v2 = vunpack.c.h.bf16 %v2246_v52  ;;  %v1120_v4 = vmul.f32 %v1112_v29, %v1112_v29 }
  0xb4   :  { %1156 = vmatpush.msrb.mxu1 %v3344_v55  ;;  %1176 = vmatpush.msrb.mxu2 %v3345_v9  ;;  %v3367_v39 = vunpack.c.l.bf16 %v2354_v35  ;;  %v1121_v9 = vmul.f32 %v1113_v0, %v1113_v0  ;;  %v3369_v49 = vunpack.c.h.bf16 %v2373_v11  ;;  %v3370_v17 = vunpack.c.l.bf16 %v2246_v52 }
  0xb5   :  { %1193 = vmatpush.msrb.mxu3 %v3346_v34  ;;  %1138 = vmatpush.msrb.mxu0 %v3347_v38  ;;  %v1122_v34 = vmul.f32 %v1114_v23, %v1114_v23  ;;  %v3368_v38 = vunpack.c.h.bf16 %v2359_v28  ;;  %v3372_v45 = vunpack.c.l.bf16 %v2359_v28  ;;  %v3373_v42 = vunpack.c.l.bf16 %v2373_v11  ;;  %v3411_v23 = vld [vmem:[#allocation12_spill] sm:$0xff] }
  0xb6   :  { %1157 = vmatpush.msrb.mxu1 %v3348_v13  ;;  %1177 = vmatpush.msrb.mxu2 %v3349_v27  ;;  %v542_v30 = vpop.f32.mrf.mxu2  ;;  %v3374_v13 = vunpack.c.h.bf16 %v2290_v47  ;;  %v3375_v52 = vunpack.c.l.bf16 %v2395_v63  ;;  %v3376_v27 = vunpack.c.h.bf16 %v2403_v44  ;;  %v3377_v22 = vunpack.c.h.bf16 %v2408_v43 }
  0xb7   :  { %1194 = vmatpush.msrb.mxu3 %v3350_v19  ;;  %1139 = vmatpush.msrb.mxu0 %v3351_v16  ;;  %v543_v55 = vadd.f32 %v542_v30, %v279_v3  ;;  %v3378_v28 = vunpack.c.l.bf16 %v2290_v47  ;;  %v3379_v11 = vunpack.c.h.bf16 %v2434_v57  ;;  %v3380_v19 = vunpack.c.l.bf16 %v2403_v44  ;;  %v3414_v30 = vld [vmem:[#allocation17_spill] sm:$0xff] }
  0xb8   :  { %1158 = vmatpush.msrb.mxu1 %v3352_v10  ;;  %1178 = vmatpush.msrb.mxu2 %v3353_v7  ;;  %v642_v46 = vpop.f32.mrf.mxu3  ;;  %v3381_v16 = vunpack.c.l.bf16 %v2408_v43  ;;  %v3383_v6 = vunpack.c.l.bf16 %v2434_v57  ;;  %v3384_v10 = vunpack.c.h.bf16 %v2447_v37  ;;  %v3385_v47 = vunpack.c.h.bf16 %v2452_v40 }
  0xb9   :  { %1195 = vmatpush.msrb.mxu3 %v3354_v14  ;;  %1140 = vmatpush.msrb.mxu0 %v3355_v50  ;;  %v2894_v1 = vadd.f32 %v1688_v41, %v642_v46  ;;  %v3371_v41 = vunpack.c.h.bf16 %v2395_v63  ;;  %v1115_v35 = vsub.f32 %v2783_v20, %v543_v55  ;;  %v3382_v63 = vunpack.c.h.bf16 %v2334_v61 }
  0xba   :  { %1159 = vmatpush.msrb.mxu1 %v3356_v59  ;;  %1179 = vmatpush.msrb.mxu2 %v3357_v53  ;;  %v3386_v7 = vunpack.c.l.bf16 %v2334_v61  ;;  %v3387_v44 = vunpack.c.h.bf16 %v2478_v31  ;;  %v3388_v43 = vunpack.c.l.bf16 %v2447_v37  ;;  %v3389_v46 = vunpack.c.l.bf16 %v2452_v40  ;;  %v3395_v37 = vld [vmem:[#allocation13_spill] sm:$0xff] }
  0xbb   :  { %1196 = vmatpush.msrb.mxu3 %v3358_v18  ;;  %1141 = vmatpush.msrb.mxu0 %v3359_v26  ;;  %v1095_v60 = vsel %vm1094_vm1, %v2894_v1, -inf  ;;  %v902_v25 = vsel %vm901_vm2, %v2894_v1, -inf  ;;  %v1123_v15 = vmul.f32 %v1115_v35, %v1115_v35  ;;  %v3390_v57 = vunpack.c.h.bf16 %v2378_v56  ;;  %v3402_v26 = vld [vmem:[#allocation14_spill] sm:$0xff] }
  0xbc   :  { %1160 = vmatpush.msrb.mxu1 %v3360_v12  ;;  %1180 = vmatpush.msrb.mxu2 %v3361_v51  ;;  %v3391_v14 = vunpack.c.l.bf16 %v2478_v31  ;;  %v3392_v50 = vunpack.c.h.bf16 %v2491_v48  ;;  %v3393_v61 = vunpack.c.h.bf16 %v2496_v24  ;;  %v3394_v8 = vunpack.c.l.bf16 %v2378_v56  ;;  %v3399_v31 = vld [vmem:[#allocation11_spill] sm:$0xff] }
  0xbd   :  { %1197 = vmatpush.msrb.mxu3 %v3362_v21  ;;  %1142 = vmatpush.msrb.mxu0 %v3363_v54  ;;  %v3396_v32 = vunpack.c.h.bf16 %v3395_v37  ;;  %v3397_v40 = vunpack.c.l.bf16 %v2491_v48  ;;  %v3398_v59 = vunpack.c.l.bf16 %v2496_v24  ;;  %v3400_v53 = vunpack.c.h.bf16 %v3399_v31  ;;  %v3404_v56 = vld [vmem:[#allocation15_spill] sm:$0xff]  ;;  %v3407_v48 = vld [vmem:[#allocation16_spill] sm:$0xff] }
  0xbe   :  { %1161 = vmatpush.msrb.mxu1 %v3364_v36  ;;  %1181 = vmatpush.msrb.mxu2 %v3365_v5  ;;  %v3401_v18 = vunpack.c.l.bf16 %v3395_v37  ;;  %v3403_v29 = vunpack.c.h.bf16 %v3402_v26  ;;  %v3405_v12 = vunpack.c.h.bf16 %v3404_v56  ;;  %v3406_v51 = vunpack.c.l.bf16 %v3399_v31  ;;  %v3416_v5 = vld [vmem:[#allocation18_spill] sm:$0xff]  ;;  %v3443_v37 = vld [vmem:[#allocation27_spill] sm:$0xff] }
  0xbf   :  { %1198 = vmatpush.msrb.mxu3 %v3366_v2  ;;  %1096 = vmax.xlane.f32.xlu0 %v1095_v60  ;;  %v3408_v60 = vunpack.c.h.bf16 %v3407_v48  ;;  %v3409_v24 = vunpack.c.l.bf16 %v3402_v26  ;;  %v3410_v3 = vunpack.c.l.bf16 %v3404_v56  ;;  %v280_v0 = vperm.slane %v2854_v33, 4  ;;  %v3447_v26 = vld [vmem:[#allocation28_spill] sm:$0xff] }
  0xc0   :  { %903 = vmax.xlane.f32.xlu1 %v902_v25  ;;  %1143 = vmatpush.msrb.mxu0 %v3367_v39  ;;  %v3412_v21 = vunpack.c.h.bf16 %v3411_v23  ;;  %v3413_v54 = vunpack.c.l.bf16 %v3407_v48  ;;  %v281_v25 = vperm.slane %v2854_v33, 5  ;;  %v3415_v36 = vunpack.c.h.bf16 %v3414_v30 }
  0xc1   :  { %1162 = vmatpush.msrb.mxu1 %v3368_v38  ;;  %1182 = vmatpush.msrb.mxu2 %v3369_v49  ;;  %v3417_v2 = vunpack.c.h.bf16 %v3416_v5  ;;  %v282_v39 = vperm.slane %v2854_v33, 6  ;;  %v3418_v55 = vunpack.c.l.bf16 %v3411_v23  ;;  %v602_v38 = vpop.f32.mrf.mxu1  ;;  %v3421_v49 = vunpack.c.l.bf16 %v3414_v30 }
  0xc2   :  { %1199 = vmatpush.msrb.mxu3 %v3370_v17  ;;  %1144 = vmatmul.f32.vlgmr.msrb.gmra.mxu0 %v1120_v4  ;;  %v582_v4 = vpop.f32.mrf.mxu0  ;;  %v3422_v17 = vunpack.c.l.bf16 %v3416_v5  ;;  %v3449_v56 = vunpack.c.l.bf16 %v3443_v37  ;;  %v3460_v5 = vld [vmem:[#allocation32_spill] sm:$0xff] }
  0xc3   :  { %1208 = vmatpush.msra.mxu0 %v3371_v41  ;;  %1163 = vmatpush.msrb.mxu1 %v3372_v45  ;;  %v563_v41 = vadd.f32 %v2849_v58, %v280_v0  ;;  %v3423_v45 = vld [vmem:[#allocation20_spill] sm:$0xff] }
  0xc4   :  { %1183 = vmatpush.msrb.mxu2 %v3373_v42  ;;  %1200 = vmatpush.msrb.mxu3 %v3374_v13  ;;  %v3424_v35 = vunpack.c.h.bf16 %v3423_v45  ;;  %v583_v13 = vadd.f32 %v582_v4, %v281_v25 }
  0xc5   :  { %1164 = vmatmul.f32.vlgmr.msrb.gmra.mxu1 %v1121_v9  ;;  %1184 = vmatmul.f32.vlgmr.msrb.gmra.mxu2 %v1122_v34  ;;  %v3419_v9 = vld [vmem:[#allocation19_spill] sm:$0xff] }
  0xc6   :  { %1209 = vmatpush.msra.mxu0 %v3375_v52  ;;  %1228 = vmatpush.msra.mxu1 %v3376_v27  ;;  %v3420_v34 = vunpack.c.h.bf16 %v3419_v9  ;;  %v3425_v42 = vunpack.c.l.bf16 %v3419_v9  ;;  %v3426_v52 = vld [vmem:[#allocation21_spill] sm:$0xff] }
  0xc7   :  { %1248 = vmatpush.msra.mxu2 %v3377_v22  ;;  %1201 = vmatpush.msrb.mxu3 %v3378_v28  ;;  %v3427_v27 = vunpack.c.h.bf16 %v3426_v52  ;;  %v3428_v22 = vld [vmem:[#allocation22_spill] sm:$0xff]  ;;  %v3433_v58 = vunpack.c.l.bf16 %v3426_v52 }
  0xc8   :  { %1210 = vmatpush.msra.mxu0 %v3379_v11  ;;  %1229 = vmatpush.msra.mxu1 %v3380_v19  ;;  %v3429_v28 = vunpack.c.h.bf16 %v3428_v22  ;;  %v3430_v11 = vunpack.c.l.bf16 %v3423_v45  ;;  %v3431_v19 = vld [vmem:[#allocation23_spill] sm:$0xff] }
  0xc9   :  { %1249 = vmatpush.msra.mxu2 %v3381_v16  ;;  %1202 = vmatpush.msrb.mxu3 %v3382_v63  ;;  %v3432_v16 = vunpack.c.h.bf16 %v3431_v19  ;;  %v3434_v63 = vunpack.c.l.bf16 %v3428_v22 }
  0xca   :  { %1211 = vmatpush.msra.mxu0 %v3383_v6  ;;  %1230 = vmatpush.msra.mxu1 %v3384_v10  ;;  %v283_v6 = vperm.slane %v2854_v33, 7  ;;  %v1116_v10 = vsub.f32 %v2783_v20, %v563_v41 }
  0xcb   :  { %1250 = vmatpush.msra.mxu2 %v3385_v47  ;;  %1203 = vmatpush.msrb.mxu3 %v3386_v7  ;;  %v3435_v47 = vld [vmem:[#allocation24_spill] sm:$0xff] }
  0xcc   :  { %1204 = vmatmul.f32.vlgmr.msrb.gmra.mxu3 %v1123_v15  ;;  %1212 = vmatpush.msra.mxu0 %v3387_v44  ;;  %v603_v15 = vadd.f32 %v602_v38, %v282_v39  ;;  %v3436_v7 = vunpack.c.h.bf16 %v3435_v47  ;;  %v1117_v44 = vsub.f32 %v2783_v20, %v583_v13  ;;  %v3442_v33 = vunpack.c.l.bf16 %v3435_v47 }
  0xcd   :  { %1231 = vmatpush.msra.mxu1 %v3388_v43  ;;  %1251 = vmatpush.msra.mxu2 %v3389_v46  ;;  %v3437_v43 = vunpack.c.l.bf16 %v3431_v19  ;;  %v622_v46 = vpop.f32.mrf.mxu2 }
  0xce   :  { %1268 = vmatpush.msra.mxu3 %v3390_v57  ;;  %1213 = vmatpush.msra.mxu0 %v3391_v14  ;;  %v1118_v57 = vsub.f32 %v2783_v20, %v603_v15  ;;  %v3438_v14 = vld [vmem:[#allocation25_spill] sm:$0xff]  ;;  %v623_v31 = vadd.f32 %v622_v46, %v283_v6 }
  0xcf   :  { %1232 = vmatpush.msra.mxu1 %v3392_v50  ;;  %1252 = vmatpush.msra.mxu2 %v3393_v61  ;;  %v3439_v50 = vunpack.c.h.bf16 %v3438_v14  ;;  %v3440_v61 = vld [vmem:[#allocation26_spill] sm:$0xff] }
  0xd0   :  { %1269 = vmatpush.msra.mxu3 %v3394_v8  ;;  %1214 = vmatpush.msra.mxu0 %v3396_v32  ;;  %v3441_v8 = vunpack.c.h.bf16 %v3440_v61  ;;  %v3444_v32 = vunpack.c.h.bf16 %v3443_v37  ;;  %v1119_v0 = vsub.f32 %v2783_v20, %v623_v31  ;;  %v3462_v20 = vunpack.c.l.bf16 %v3460_v5 }
  0xd1   :  { %1233 = vmatpush.msra.mxu1 %v3397_v40  ;;  %1253 = vmatpush.msra.mxu2 %v3398_v59  ;;  %v3445_v40 = vunpack.c.l.bf16 %v3438_v14  ;;  %v3446_v59 = vunpack.c.l.bf16 %v3440_v61 }
  0xd2   :  { %1270 = vmatpush.msra.mxu3 %v3400_v53  ;;  %1215 = vmatpush.msra.mxu0 %v3401_v18  ;;  %v1124_v53 = vmul.f32 %v1116_v10, %v1116_v10  ;;  %v1125_v18 = vmul.f32 %v1117_v44, %v1117_v44 }
  0xd3   :  { %1234 = vmatpush.msra.mxu1 %v3403_v29  ;;  %1254 = vmatpush.msra.mxu2 %v3405_v12  ;;  %v3448_v29 = vunpack.c.h.bf16 %v3447_v26  ;;  %v1126_v12 = vmul.f32 %v1118_v57, %v1118_v57 }
  0xd4   :  { %1271 = vmatpush.msra.mxu3 %v3406_v51  ;;  %1216 = vmatpush.msra.mxu0 %v3408_v60  ;;  %v3450_v51 = vld [vmem:[#allocation29_spill] sm:$0xff]  ;;  %v3452_v60 = vld [vmem:[#allocation30_spill] sm:$0xff] }
  0xd5   :  { %1235 = vmatpush.msra.mxu1 %v3409_v24  ;;  %1255 = vmatpush.msra.mxu2 %v3410_v3  ;;  %v3451_v48 = vunpack.c.h.bf16 %v3450_v51  ;;  %v3453_v24 = vunpack.c.h.bf16 %v3452_v60  ;;  %v3454_v3 = vunpack.c.l.bf16 %v3447_v26  ;;  %v3455_v23 = vunpack.c.l.bf16 %v3450_v51 }
  0xd6   :  { %1272 = vmatpush.msra.mxu3 %v3412_v21  ;;  %1217 = vmatpush.msra.mxu0 %v3413_v54  ;;  %v3456_v21 = vunpack.c.l.bf16 %v3452_v60  ;;  %v3457_v54 = vld [vmem:[#allocation31_spill] sm:$0xff] }
  0xd7   :  { %1236 = vmatpush.msra.mxu1 %v3415_v36  ;;  %1256 = vmatpush.msra.mxu2 %v3417_v2  ;;  %v3458_v25 = vunpack.c.h.bf16 %v3457_v54  ;;  %v3459_v30 = vunpack.c.l.bf16 %v3457_v54  ;;  %v1127_v36 = vmul.f32 %v1119_v0, %v1119_v0  ;;  %v3461_v2 = vunpack.c.h.bf16 %v3460_v5 }
  0xd8   :  { %1273 = vmatpush.msra.mxu3 %v3418_v55  ;;  %1218 = vmatpush.msra.mxu0 %v3420_v34 }
  0xd9   :  { %1237 = vmatpush.msra.mxu1 %v3421_v49  ;;  %1257 = vmatpush.msra.mxu2 %v3422_v17 }
  0xda   :  { %1274 = vmatpush.msra.mxu3 %v3424_v35  ;;  %1219 = vmatpush.msra.mxu0 %v3425_v42 }
  0xdb   :  { %1238 = vmatpush.msra.mxu1 %v3427_v27  ;;  %1258 = vmatpush.msra.mxu2 %v3429_v28 }
  0xdc   :  { %1275 = vmatpush.msra.mxu3 %v3430_v11  ;;  %1220 = vmatpush.msra.mxu0 %v3432_v16 }
  0xdd   :  { %1239 = vmatpush.msra.mxu1 %v3433_v58  ;;  %1259 = vmatpush.msra.mxu2 %v3434_v63 }
  0xde   :  { %1276 = vmatpush.msra.mxu3 %v3436_v7  ;;  %1221 = vmatpush.msra.mxu0 %v3437_v43 }
  0xdf   :  { %1240 = vmatpush.msra.mxu1 %v3439_v50  ;;  %1260 = vmatpush.msra.mxu2 %v3441_v8 }
  0xe0   :  { %1277 = vmatpush.msra.mxu3 %v3442_v33  ;;  %1222 = vmatpush.msra.mxu0 %v3444_v32 }
  0xe1   :  { %1241 = vmatpush.msra.mxu1 %v3445_v40  ;;  %1261 = vmatpush.msra.mxu2 %v3446_v59 }
  0xe2   :  { %1278 = vmatpush.msra.mxu3 %v3448_v29  ;;  %1223 = vmatpush.msra.mxu0 %v3449_v56 }
  0xe3   :  { %1242 = vmatpush.msra.mxu1 %v3451_v48  ;;  %1262 = vmatpush.msra.mxu2 %v3453_v24 }
  0xe4   :  { %1279 = vmatpush.msra.mxu3 %v3454_v3  ;;  %1224 = vmatmul.f32.vlgmr.msra.gmra.mxu0 %v1124_v53  ;;  %v1297_v3 = vstv %s1340_s3 }
  0xe5   :  { %1243 = vmatpush.msra.mxu1 %v3455_v23  ;;  %1263 = vmatpush.msra.mxu2 %v3456_v21  ;;  %v3464_v21 = vstv %s2765_s27 }
  0xe6   :  { %1280 = vmatpush.msra.mxu3 %v3458_v25  ;;  %1244 = vmatmul.f32.vlgmr.msra.gmra.mxu1 %v1125_v18  ;;  %v3463_v18 = vstv %s2767_s28  ;;  %v144_v54 = vmul.f32 %v3464_v21, %v2785_v62 }
  0xe7   :  { %1264 = vmatmul.f32.vlgmr.msra.gmra.mxu2 %v1126_v12  ;;  %v146_v26 = vmul.f32 %v3463_v18, %v2785_v62  ;;  %v1295_v62 = vstv %s1339_s19 }
  0xe8   :  { %1281 = vmatpush.msra.mxu3 %v3459_v30 }
  0xea   :  { %1282 = vmatpush.msra.mxu3 %v3461_v2 }
  0xec   :  { %1283 = vmatpush.msra.mxu3 %v3462_v20 }
  0xed   :  { %1284 = vmatmul.f32.vlgmr.msra.gmra.mxu3 %v1127_v36 }
 0x11a   :  { %v948_v4 = vpop.f32.mrf.mxu0 }
 0x11d   :  { %v968_v39 = vpop.f32.mrf.mxu1 }
 0x11e   :  { %v969_v55 = vadd.f32 %v968_v39, %v948_v4 }
 0x123   :  { %v988_v9 = vpop.f32.mrf.mxu2 }
 0x124   :  { %v989_v34 = vadd.f32 %v988_v9, %v969_v55  ;;  %v1028_v17 = vpop.f32.mrf.mxu0 }
 0x12a   :  { %v1008_v38 = vpop.f32.mrf.mxu3 }
 0x12b   :  { %v1009_v49 = vadd.f32 %v1008_v38, %v989_v34 }
 0x12d   :  { %v1029_v41 = vadd.f32 %v1028_v17, %v1009_v49 }
 0x130   :  { %v1048_v45 = vpop.f32.mrf.mxu1 }
 0x131   :  { %v1049_v35 = vadd.f32 %v1048_v45, %v1029_v41  ;;  %v1068_v42 = vpop.f32.mrf.mxu2 }
 0x132   :  { %v1097_v13 = vpop.xlane.xlu0 %1096 }
 0x133   :  { %v1098_v52 = vsub.f32 %v2894_v1, %v1097_v13  ;;  %v1069_v27 = vadd.f32 %v1068_v42, %v1049_v35  ;;  %v904_v33 = vpop.xlane.xlu1 %903 }
 0x134   :  { %v1088_v22 = vpop.f32.mrf.mxu3  ;;  %v905_v37 = vsub.f32 %v2894_v1, %v904_v33 }
 0x135   :  { %v1099_v28 = vmul.f32 1.442695, %v1098_v52  ;;  %v3084_v15 = vadd.f32 %v1088_v22, %v1069_v27 }
 0x136   :  { %v906_v32 = vmul.f32 1.442695, %v905_v37 }
 0x137   :  { %1689 = vpow2.f32 %v1099_v28  ;;  %v1091_v39 = vmul.f32 0.5, %v3084_v15 }
 0x138   :  { %1691 = vpow2.f32 %v906_v32 }
 0x13d   :  { %v1690_v11 = vpop.eup %1689 }
 0x13e   :  { %1102 = vrot.lane.b32.xlu0 %v1690_v11, %s1764_s6  ;;  %v1692_v40 = vpop.eup %1691 }
 0x13f   :  { %v1145_v19 = vpop.f32.mrf.mxu0  ;;  %v908_v59 = vsel %vm901_vm2, %v1692_v40, 0.0 }
 0x142   :  { %v1165_v16 = vpop.f32.mrf.mxu1 }
 0x143   :  { %v1166_v63 = vadd.f32 %v1165_v16, %v1145_v19 }
 0x148   :  { %v1185_v58 = vpop.f32.mrf.mxu2 }
 0x149   :  { %v1186_v10 = vadd.f32 %v1185_v58, %v1166_v63 }
 0x14f   :  { %v1205_v6 = vpop.f32.mrf.mxu3 }
 0x150   :  { %v1206_v7 = vadd.f32 %v1205_v6, %v1186_v10 }
 0x161   :  { %v1225_v47 = vpop.f32.mrf.mxu0 }
 0x162   :  { %v1226_v44 = vadd.f32 %v1225_v47, %v1206_v7 }
 0x163   :  { %v1245_v43 = vpop.f32.mrf.mxu1 }
 0x164   :  { %v1246_v57 = vadd.f32 %v1245_v43, %v1226_v44 }
 0x16a   :  { %v1265_v46 = vpop.f32.mrf.mxu2 }
 0x16b   :  { %v1266_v14 = vadd.f32 %v1265_v46, %v1246_v57 }
 0x170   :  { %v1285_v50 = vpop.f32.mrf.mxu3 }
 0x171   :  { %v1286_v61 = vadd.f32 %v1285_v50, %v1266_v14 }
 0x173   :  { %v1288_v8 = vmul.f32 0.5, %v1286_v61 }
 0x175   :  { %1290 = vrot.lane.b32.xlu2 %v1288_v8, %s1765_s13 }
 0x19e   :  { %909 = vadd.xlane.f32.xlu2 %v908_v59 }
 0x1b0   :  { %v1103_v31 = vpop.permute.xlu0 %1102 }
 0x1b1   :  { %v1105_v53 = vsel %vm901_vm2, %v1103_v31, 0.0 }
 0x1b2   :  { %1106 = vadd.xlane.f32.xlu1 %v1105_v53 }
 0x1cb   :  { %148 = vrot.lane.b32.xlu1 %v146_v26, %s1766_s14 }
 0x1cf   :  { %v1291_v60 = vpop.permute.xlu2 %1290 }
 0x211   :  { %v910_v36 = vpop.xlane.xlu2 %909 }
 0x225   :  { %v1107_v29 = vpop.xlane.xlu1 %1106 }
 0x226   :  { %1693 = vlog2.f32 %v1107_v29 }
 0x227   :  { %1695 = vlog2.f32 %v910_v36 }
 0x22c   :  { %v1694_v56 = vpop.eup %1693 }
 0x22d   :  { %v1109_v12 = vmul.f32 0.6931472, %v1694_v56  ;;  %v1696_v5 = vpop.eup %1695 }
 0x22e   :  { %v912_v2 = vmul.f32 0.6931472, %v1696_v5 }
 0x22f   :  { %v1110_v51 = vadd.f32 %v1109_v12, %v1097_v13 }
 0x230   :  { %v913_v20 = vadd.f32 %v912_v2, %v904_v33 }
 0x231   :  { %v1111_v48 = vsub.f32 %v2894_v1, %v1110_v51 }
 0x232   :  { %v914_v4 = vsub.f32 %v2894_v1, %v913_v20 }
 0x233   :  { %v1293_v24 = vsub.f32 %v1111_v48, %v1291_v60 }
 0x234   :  { %v1092_v55 = vsub.f32 %v914_v4, %v1091_v39 }
 0x235   :  { %v1362_v0 = vadd.f32 -117.62413, %v1293_v24 }
 0x236   :  { %v1361_v9 = vadd.f32 -117.62413, %v1092_v55 }
 0x237   :  { %v1298_v23 = vmul.f32 %v1362_v0, %v1297_v3 }
 0x238   :  { %v1296_v34 = vmul.f32 %v1361_v9, %v1295_v62 }
 0x239   :  { %1300 = vrot.lane.b32.xlu0 %v1298_v23, %s1764_s6 }
 0x23d   :  { %v149_v25 = vpop.permute.xlu1 %148 }
 0x23e   :  { %v151_v30 = vadd.f32 %v149_v25, %v144_v54 }
 0x240   :  { %153 = vst.msk [vmem:[#allocation5] sm:$0xff] %vm152_vm3, %v151_v30 }
 0x241   :  { %1315 = dma.vmem_to_hbm [thread:$0]  %s1311_s16, 128, %s1313_s0, [#allocation3]  }
 0x2ab   :  { %v1301_v38 = vpop.permute.xlu0 %1300 }
 0x2ac   :  { %v1303_v49 = vadd.f32 %v1301_v38, %v1296_v34 }
 0x2ae   :  { %1304 = vst.msk [vmem:[#allocation6] sm:$0xff] %vm901_vm2, %v1303_v49 }
 0x2af   :  { %1326 = dma.vmem_to_hbm [thread:$0]  %s1322_s20, 128, %s1324_s23, [#allocation7]  }
 0x2b0   :  { %1759 = dma.done.wait [#allocation3], 128  }
 0x2b1   :  { %1760 = vsyncadd [#allocation3], 4294967168 }
 0x2b2   :  { %1761 = dma.done.wait [#allocation7], 128  }
 0x2b3   :  { %1762 = vsyncadd [#allocation7], 4294967168 }
 0x2b4   :  { %1335 = vsyncpa [#allocation3], 1 }
 0x2b5   :  { %1336 = vsyncpa [#allocation7], 1 }
 0x2b6   :  { %1337 = vsyncpa [#allocation4], 1 }

</bundles_post_ra>
